<compile_context>
chip_gen: v6e
topology: v6e:2x2x1
jax: 0.10.0
libtpu: 0.0.40
codegen_flags: <defaults>
</compile_context>

<pallas_src>
import functools

import jax
import jax.numpy as jnp
from jax import lax
from jax.experimental import pallas as pl
from jax.experimental.pallas import tpu as pltpu

BN_EPS = 1e-5
MXU_DTYPE = jnp.bfloat16   # native MXU rate dtype on v5e/v6e/v7x
MAX_BLOCK = 256            # image-block rows per grid step (MXU M fill)


# ---------------------------------------------------------------------------
# Fused encoder kernel: one grid step == one block of images, all on-chip.
# ---------------------------------------------------------------------------
def _encoder_kernel(x_ref,
                    m1, s1, m2, s2, m3, s3, m4, s4, m5, s5,
                    f1w, f1b, f2w, f2b,
                    o_ref, *, relus, classifier):
    a = x_ref[...]                               # [B_blk, Cin*H*W]  bf16
    conv_m = (m1, m2, m3, m4, m5)
    conv_s = (s1, s2, s3, s4, s5)

    for m_ref, s_ref, relu in zip(conv_m, conv_s, relus):
        # Whole conv layer == one MXU matmul (pad/stride/kh/kw folded in m_ref).
        acc = jnp.dot(a, m_ref[...], preferred_element_type=jnp.float32)
        ss = s_ref[...]                          # [2, Cout*Hout*Wout] f32
        y = acc * ss[0:1, :] + ss[1:2, :]        # conv bias + folded BN (f32)
        if relu:
            y = jnp.maximum(y, 0.0)
        a = y.astype(MXU_DTYPE)                  # next layer's MXU input

    # fc1: activations are already in torch's NCHW flatten order.
    h1 = jnp.dot(a, f1w[...], preferred_element_type=jnp.float32) + f1b[...]
    h1 = jnp.maximum(h1, 0.0)

    out = jnp.dot(h1.astype(MXU_DTYPE), f2w[...],
                  preferred_element_type=jnp.float32) + f2b[...]
    if classifier:
        out = out - jnp.max(out, axis=-1, keepdims=True)
        e = jnp.exp(out)
        out = e * pl.reciprocal(jnp.sum(e, axis=-1, keepdims=True), approx=True)
    # latent (=8) < 128 lanes -> masked partial store; negligible bytes here.
    o_ref[...] = out.astype(o_ref.dtype)


# ---------------------------------------------------------------------------
# One-time parameter preparation: dense conv->matmul fold, BN fold, bf16 cast.
# ---------------------------------------------------------------------------
def _dense_conv_mat(w, h_in, h_out, stride):
    """[Cout,Cin,3,3] torch conv weight -> dense [Cin*Hin*Win, Cout*Hout*Wout]
    matrix folding both kernel taps, the zero padding and the stride.  Input
    and output flatten orders are both (c, h, w) == torch NCHW .view order."""
    c_out, c_in, _, _ = w.shape
    hi = jnp.arange(h_in)
    ho = jnp.arange(h_out)
    kk = jnp.arange(3)
    # d[k, hi, ho] = 1  iff  hi == stride*ho + k - 1   (out-of-range => pad 0)
    d = (hi[None, :, None] == stride * ho[None, None, :] + kk[:, None, None] - 1)
    d = d.astype(jnp.float32)                                   # [3, Hin, Hout]
    m = jnp.einsum("ocpq,phH,qwW->chwoHW", w.astype(jnp.float32), d, d)
    return m.reshape(c_in * h_in * h_in, c_out * h_out * h_out)


def prepare_params(params, in_channels, multipler, img_dim):
    del in_channels, multipler  # channel counts come from the weight shapes
    layer_defs = [
        ("w1", "b1", "bn1", 2, True),
        ("w2", "b2", "bn2", 1, True),
        ("w3", "b3", "bn3", 2, True),
        ("w4", "b4", "bn4", 1, True),
        ("w5", "b5", None, 1, False),
    ]
    h_in = img_dim
    args, relus = [], []
    for wk, bk, bnk, stride, relu in layer_defs:
        w = params[wk]
        b = params[bk]
        h_out = (h_in + 2 - 3) // stride + 1
        mat = _dense_conv_mat(w, h_in, h_out, stride)           # square images
        if bnk is not None:
            gamma, beta, mean, var = params[bnk]
            scale = gamma / jnp.sqrt(var + BN_EPS)
            shift = (b - mean) * scale + beta
        else:
            scale = jnp.ones((w.shape[0],), jnp.float32)
            shift = b
        # (c, h, w) flatten order -> each channel value repeats Hout*Wout times.
        ss = jnp.stack([jnp.repeat(scale, h_out * h_out),
                        jnp.repeat(shift, h_out * h_out)])
        args += [mat.astype(MXU_DTYPE), ss.astype(jnp.float32)]
        relus.append(relu)
        h_in = h_out

    hidden = params["fc1_w"].shape[0]
    latent = params["fc2_w"].shape[0]
    args += [params["fc1_w"].T.astype(MXU_DTYPE),
             params["fc1_b"].reshape(1, hidden).astype(jnp.float32),
             params["fc2_w"].T.astype(MXU_DTYPE),
             params["fc2_b"].reshape(1, latent).astype(jnp.float32)]
    return {"args": tuple(args), "relus": tuple(relus), "latent": latent}


# ---------------------------------------------------------------------------
# Forward wrapper: single pallas_call, grid over image blocks.
# ---------------------------------------------------------------------------
def _const_index_map(ndim):
    zeros = (0,) * ndim
    return lambda i: zeros


def encoder_forward(x_nchw, prep, classifier=False):
    n, c, h, w = x_nchw.shape
    # (c, h, w) flatten == torch NCHW .view order; cast to bf16 once here so
    # the input DMA is half the bytes and the kernel does no per-step cast.
    x_flat = x_nchw.reshape(n, c * h * w).astype(MXU_DTYPE)

    args = prep["args"]
    relus = prep["relus"]
    latent = prep["latent"]

    # Block of images per grid step.  At tiny batches this is one block; for
    # large batches B_blk=256 fills the MXU M dim and keeps grid length >= 2
    # so v7x can shard blocks across its two TensorCores.
    b_blk = n if n <= MAX_BLOCK else MAX_BLOCK
    num_blocks = pl.cdiv(n, b_blk)
    n_pad = num_blocks * b_blk
    if n_pad != n:
        x_flat = jnp.pad(x_flat, ((0, n_pad - n), (0, 0)))

    in_specs = [pl.BlockSpec((b_blk, c * h * w), lambda i: (i, 0))]
    in_specs += [pl.BlockSpec(a.shape, _const_index_map(a.ndim)) for a in args]

    # Advisory cost hint for XLA scheduling around the custom call.
    flops = 0
    for mat in args[0:10:2]:
        flops += 2 * mat.shape[0] * mat.shape[1]
    flops += 2 * args[10].shape[0] * args[10].shape[1]
    flops += 2 * args[12].shape[0] * args[12].shape[1]
    flops *= n_pad
    transcendentals = n_pad * latent if classifier else 0
    bytes_accessed = (x_flat.size * x_flat.dtype.itemsize
                      + n_pad * latent * 4
                      + sum(a.size * a.dtype.itemsize for a in args))

    kernel = functools.partial(_encoder_kernel, relus=relus,
                               classifier=classifier)
    out = pl.pallas_call(
        kernel,
        out_shape=jax.ShapeDtypeStruct((n_pad, latent), jnp.float32),
        grid=(num_blocks,),
        in_specs=in_specs,
        out_specs=pl.BlockSpec((b_blk, latent), lambda i: (i, 0)),
        compiler_params=pltpu.CompilerParams(
            dimension_semantics=("parallel",)),
        cost_estimate=pl.CostEstimate(flops=int(flops),
                                      transcendentals=int(transcendentals),
                                      bytes_accessed=int(bytes_accessed)),
    )(x_flat, *args)
    return out[:n]


# ---------------------------------------------------------------------------
# Pure-JAX reference (lax.conv) for correctness check
# ---------------------------------------------------------------------------
def _ref_conv(x, w, b, stride):
    y = lax.conv_general_dilated(x, w, (stride, stride), [(1, 1), (1, 1)],
                                 dimension_numbers=("NCHW", "OIHW", "NCHW"))
    return y + b[None, :, None, None]


def _ref_bn(x, bn):
    gamma, beta, mean, var = bn
    return (x - mean[None, :, None, None]) / jnp.sqrt(var[None, :, None, None] + BN_EPS) \
        * gamma[None, :, None, None] + beta[None, :, None, None]


def encoder_reference(x, p, classifier=False):
    x = jax.nn.relu(_ref_bn(_ref_conv(x, p["w1"], p["b1"], 2), p["bn1"]))
    x = jax.nn.relu(_ref_bn(_ref_conv(x, p["w2"], p["b2"], 1), p["bn2"]))
    x = jax.nn.relu(_ref_bn(_ref_conv(x, p["w3"], p["b3"], 2), p["bn3"]))
    x = jax.nn.relu(_ref_bn(_ref_conv(x, p["w4"], p["b4"], 1), p["bn4"]))
    x = _ref_conv(x, p["w5"], p["b5"], 1).reshape(x.shape[0], -1)
    x = jax.nn.relu(x @ p["fc1_w"].T + p["fc1_b"])
    x = x @ p["fc2_w"].T + p["fc2_b"]
    if classifier:
        x = jax.nn.softmax(x, axis=-1)
    return x


# ---------------------------------------------------------------------------
# Deterministic parameter init (matches the PyTorch module's shapes)
# ---------------------------------------------------------------------------
def init_params(key, in_channels, multipler, latent_dim, hidden_dim, img_dim):
    ks = jax.random.split(key, 16)
    m = multipler

    def conv_w(k, cout, cin):
        return 0.1 * jax.random.normal(k, (cout, cin, 3, 3), jnp.float32)

    def bn_params(k, c):
        k1, k2, k3, k4 = jax.random.split(k, 4)
        gamma = 1.0 + 0.1 * jax.random.normal(k1, (c,), jnp.float32)
        beta = 0.1 * jax.random.normal(k2, (c,), jnp.float32)
        mean = 0.1 * jax.random.normal(k3, (c,), jnp.float32)
        var = 1.0 + 0.1 * jax.random.uniform(k4, (c,), jnp.float32)
        return (gamma, beta, mean, var)

    flat = (img_dim // 2 ** 2) ** 2 * m * 4
    return {
        "w1": conv_w(ks[0], m, in_channels), "b1": 0.05 * jax.random.normal(ks[1], (m,)),
        "w2": conv_w(ks[2], 2 * m, m), "b2": 0.05 * jax.random.normal(ks[3], (2 * m,)),
        "w3": conv_w(ks[4], 4 * m, 2 * m), "b3": 0.05 * jax.random.normal(ks[5], (4 * m,)),
        "w4": conv_w(ks[6], 4 * m, 4 * m), "b4": 0.05 * jax.random.normal(ks[7], (4 * m,)),
        "w5": conv_w(ks[8], 4 * m, 4 * m), "b5": 0.05 * jax.random.normal(ks[9], (4 * m,)),
        "bn1": bn_params(ks[10], m), "bn2": bn_params(ks[11], 2 * m),
        "bn3": bn_params(ks[12], 4 * m), "bn4": bn_params(ks[13], 4 * m),
        "fc1_w": 0.05 * jax.random.normal(ks[14], (hidden_dim, flat), jnp.float32),
        "fc1_b": jnp.zeros((hidden_dim,), jnp.float32),
        "fc2_w": 0.05 * jax.random.normal(ks[15], (latent_dim, hidden_dim), jnp.float32),
        "fc2_b": jnp.zeros((latent_dim,), jnp.float32),
    }


if __name__ == "__main__":
    in_channels, multipler, latent_dim, hidden_dim, img_dim = 4, 4, 8, 32, 16
    batch = 2

    key = jax.random.PRNGKey(0)
    kx, kp = jax.random.split(key)
    x = jax.random.normal(kx, (batch, in_channels, img_dim, img_dim), jnp.float32)
    params = init_params(kp, in_channels, multipler, latent_dim, hidden_dim, img_dim)

    # One-time weight preprocessing (outside the jitted step).
    prep = prepare_params(params, in_channels, multipler, img_dim)

    fwd = jax.jit(lambda xb: encoder_forward(xb, prep, classifier=False))
    out = jax.block_until_ready(fwd(x))
    assert out.shape == (batch, latent_dim), out.shape

    ref = jax.block_until_ready(encoder_reference(x, params, classifier=False))
    max_err = float(jnp.max(jnp.abs(out - ref)))
    # bf16 MXU inputs; compare against the f32 reference with a bf16-appropriate
    # tolerance (accumulation/epilogues stay f32).
    assert jnp.allclose(out, ref, atol=2e-2, rtol=2e-2), f"max abs err {max_err}"

    print("KERNEL_OK")
</pallas_src>

<mosaic_0001>
module attributes {stable_mosaic.version = 11 : i64} {
  func.func @_encoder_kernel(%arg0: i32, %arg1: memref<2x1024xbf16, #tpu.memory_space<vmem>>, %arg2: memref<1024x256xbf16, #tpu.memory_space<vmem>>, %arg3: memref<2x256xf32, #tpu.memory_space<vmem>>, %arg4: memref<256x512xbf16, #tpu.memory_space<vmem>>, %arg5: memref<2x512xf32, #tpu.memory_space<vmem>>, %arg6: memref<512x256xbf16, #tpu.memory_space<vmem>>, %arg7: memref<2x256xf32, #tpu.memory_space<vmem>>, %arg8: memref<256x256xbf16, #tpu.memory_space<vmem>>, %arg9: memref<2x256xf32, #tpu.memory_space<vmem>>, %arg10: memref<256x256xbf16, #tpu.memory_space<vmem>>, %arg11: memref<2x256xf32, #tpu.memory_space<vmem>>, %arg12: memref<256x32xbf16, #tpu.memory_space<vmem>>, %arg13: memref<1x32xf32, #tpu.memory_space<vmem>>, %arg14: memref<32x8xbf16, #tpu.memory_space<vmem>>, %arg15: memref<1x8xf32, #tpu.memory_space<vmem>>, %arg16: memref<2x8xf32, #tpu.memory_space<vmem>>) attributes {dimension_semantics = [#tpu.dimension_semantics<parallel>], iteration_bounds = array<i64: 1>, scalar_prefetch = 0 : i64, scratch_operands = 0 : i64, tpu.core_type = #tpu.core_type<tc>, window_params = [{transform_indices = @transform_0, window_bounds = array<i64: 2, 1024>}, {pipeline_mode = #tpu.pipeline_mode<synchronous>, transform_indices = @transform_1, window_bounds = array<i64: 1024, 256>}, {pipeline_mode = #tpu.pipeline_mode<synchronous>, transform_indices = @transform_2, window_bounds = array<i64: 2, 256>}, {pipeline_mode = #tpu.pipeline_mode<synchronous>, transform_indices = @transform_3, window_bounds = array<i64: 256, 512>}, {pipeline_mode = #tpu.pipeline_mode<synchronous>, transform_indices = @transform_4, window_bounds = array<i64: 2, 512>}, {pipeline_mode = #tpu.pipeline_mode<synchronous>, transform_indices = @transform_5, window_bounds = array<i64: 512, 256>}, {pipeline_mode = #tpu.pipeline_mode<synchronous>, transform_indices = @transform_6, window_bounds = array<i64: 2, 256>}, {pipeline_mode = #tpu.pipeline_mode<synchronous>, transform_indices = @transform_7, window_bounds = array<i64: 256, 256>}, {pipeline_mode = #tpu.pipeline_mode<synchronous>, transform_indices = @transform_8, window_bounds = array<i64: 2, 256>}, {pipeline_mode = #tpu.pipeline_mode<synchronous>, transform_indices = @transform_9, window_bounds = array<i64: 256, 256>}, {pipeline_mode = #tpu.pipeline_mode<synchronous>, transform_indices = @transform_10, window_bounds = array<i64: 2, 256>}, {pipeline_mode = #tpu.pipeline_mode<synchronous>, transform_indices = @transform_11, window_bounds = array<i64: 256, 32>}, {pipeline_mode = #tpu.pipeline_mode<synchronous>, transform_indices = @transform_12, window_bounds = array<i64: 1, 32>}, {pipeline_mode = #tpu.pipeline_mode<synchronous>, transform_indices = @transform_13, window_bounds = array<i64: 32, 8>}, {pipeline_mode = #tpu.pipeline_mode<synchronous>, transform_indices = @transform_14, window_bounds = array<i64: 1, 8>}, {transform_indices = @transform_15, window_bounds = array<i64: 2, 8>}]} {
    %c0 = arith.constant 0 : index
    %c0_0 = arith.constant 0 : index
    %0 = vector.load %arg1[%c0, %c0_0] : memref<2x1024xbf16, #tpu.memory_space<vmem>>, vector<2x1024xbf16>
    %c0_1 = arith.constant 0 : index
    %c0_2 = arith.constant 0 : index
    %1 = vector.load %arg2[%c0_1, %c0_2] : memref<1024x256xbf16, #tpu.memory_space<vmem>>, vector<1024x256xbf16>
    %cst = arith.constant dense<0.000000e+00> : vector<2x256xf32>
    %2 = tpu.matmul %0, %1, %cst {dimension_numbers = #tpu.dot_dimension_numbers<[1], [0], [0], [1], [0, 0, 1, 1], [], []>} : vector<2x1024xbf16>, vector<1024x256xbf16>, vector<2x256xf32> -> vector<2x256xf32>
    %c0_3 = arith.constant 0 : index
    %c0_4 = arith.constant 0 : index
    %3 = vector.load %arg3[%c0_3, %c0_4] : memref<2x256xf32, #tpu.memory_space<vmem>>, vector<2x256xf32>
    %4 = vector.extract_strided_slice %3 {offsets = [0, 0], sizes = [1, 256], strides = [1, 1]} : vector<2x256xf32> to vector<1x256xf32>
    %5 = vector.broadcast %4 : vector<1x256xf32> to vector<2x256xf32>
    %6 = arith.mulf %2, %5 : vector<2x256xf32>
    %7 = vector.extract_strided_slice %3 {offsets = [1, 0], sizes = [1, 256], strides = [1, 1]} : vector<2x256xf32> to vector<1x256xf32>
    %8 = vector.broadcast %7 : vector<1x256xf32> to vector<2x256xf32>
    %9 = arith.addf %6, %8 : vector<2x256xf32>
    %cst_5 = arith.constant 0.000000e+00 : f32
    %10 = vector.broadcast %cst_5 : f32 to vector<2x256xf32>
    %11 = arith.maximumf %9, %10 : vector<2x256xf32>
    %12 = arith.truncf %11 : vector<2x256xf32> to vector<2x256xbf16>
    %c0_6 = arith.constant 0 : index
    %c0_7 = arith.constant 0 : index
    %13 = vector.load %arg4[%c0_6, %c0_7] : memref<256x512xbf16, #tpu.memory_space<vmem>>, vector<256x512xbf16>
    %cst_8 = arith.constant dense<0.000000e+00> : vector<2x512xf32>
    %14 = tpu.matmul %12, %13, %cst_8 {dimension_numbers = #tpu.dot_dimension_numbers<[1], [0], [0], [1], [0, 0, 1, 1], [], []>} : vector<2x256xbf16>, vector<256x512xbf16>, vector<2x512xf32> -> vector<2x512xf32>
    %c0_9 = arith.constant 0 : index
    %c0_10 = arith.constant 0 : index
    %15 = vector.load %arg5[%c0_9, %c0_10] : memref<2x512xf32, #tpu.memory_space<vmem>>, vector<2x512xf32>
    %16 = vector.extract_strided_slice %15 {offsets = [0, 0], sizes = [1, 512], strides = [1, 1]} : vector<2x512xf32> to vector<1x512xf32>
    %17 = vector.broadcast %16 : vector<1x512xf32> to vector<2x512xf32>
    %18 = arith.mulf %14, %17 : vector<2x512xf32>
    %19 = vector.extract_strided_slice %15 {offsets = [1, 0], sizes = [1, 512], strides = [1, 1]} : vector<2x512xf32> to vector<1x512xf32>
    %20 = vector.broadcast %19 : vector<1x512xf32> to vector<2x512xf32>
    %21 = arith.addf %18, %20 : vector<2x512xf32>
    %cst_11 = arith.constant 0.000000e+00 : f32
    %22 = vector.broadcast %cst_11 : f32 to vector<2x512xf32>
    %23 = arith.maximumf %21, %22 : vector<2x512xf32>
    %24 = arith.truncf %23 : vector<2x512xf32> to vector<2x512xbf16>
    %c0_12 = arith.constant 0 : index
    %c0_13 = arith.constant 0 : index
    %25 = vector.load %arg6[%c0_12, %c0_13] : memref<512x256xbf16, #tpu.memory_space<vmem>>, vector<512x256xbf16>
    %cst_14 = arith.constant dense<0.000000e+00> : vector<2x256xf32>
    %26 = tpu.matmul %24, %25, %cst_14 {dimension_numbers = #tpu.dot_dimension_numbers<[1], [0], [0], [1], [0, 0, 1, 1], [], []>} : vector<2x512xbf16>, vector<512x256xbf16>, vector<2x256xf32> -> vector<2x256xf32>
    %c0_15 = arith.constant 0 : index
    %c0_16 = arith.constant 0 : index
    %27 = vector.load %arg7[%c0_15, %c0_16] : memref<2x256xf32, #tpu.memory_space<vmem>>, vector<2x256xf32>
    %28 = vector.extract_strided_slice %27 {offsets = [0, 0], sizes = [1, 256], strides = [1, 1]} : vector<2x256xf32> to vector<1x256xf32>
    %29 = vector.broadcast %28 : vector<1x256xf32> to vector<2x256xf32>
    %30 = arith.mulf %26, %29 : vector<2x256xf32>
    %31 = vector.extract_strided_slice %27 {offsets = [1, 0], sizes = [1, 256], strides = [1, 1]} : vector<2x256xf32> to vector<1x256xf32>
    %32 = vector.broadcast %31 : vector<1x256xf32> to vector<2x256xf32>
    %33 = arith.addf %30, %32 : vector<2x256xf32>
    %cst_17 = arith.constant 0.000000e+00 : f32
    %34 = vector.broadcast %cst_17 : f32 to vector<2x256xf32>
    %35 = arith.maximumf %33, %34 : vector<2x256xf32>
    %36 = arith.truncf %35 : vector<2x256xf32> to vector<2x256xbf16>
    %c0_18 = arith.constant 0 : index
    %c0_19 = arith.constant 0 : index
    %37 = vector.load %arg8[%c0_18, %c0_19] : memref<256x256xbf16, #tpu.memory_space<vmem>>, vector<256x256xbf16>
    %cst_20 = arith.constant dense<0.000000e+00> : vector<2x256xf32>
    %38 = tpu.matmul %36, %37, %cst_20 {dimension_numbers = #tpu.dot_dimension_numbers<[1], [0], [0], [1], [0, 0, 1, 1], [], []>} : vector<2x256xbf16>, vector<256x256xbf16>, vector<2x256xf32> -> vector<2x256xf32>
    %c0_21 = arith.constant 0 : index
    %c0_22 = arith.constant 0 : index
    %39 = vector.load %arg9[%c0_21, %c0_22] : memref<2x256xf32, #tpu.memory_space<vmem>>, vector<2x256xf32>
    %40 = vector.extract_strided_slice %39 {offsets = [0, 0], sizes = [1, 256], strides = [1, 1]} : vector<2x256xf32> to vector<1x256xf32>
    %41 = vector.broadcast %40 : vector<1x256xf32> to vector<2x256xf32>
    %42 = arith.mulf %38, %41 : vector<2x256xf32>
    %43 = vector.extract_strided_slice %39 {offsets = [1, 0], sizes = [1, 256], strides = [1, 1]} : vector<2x256xf32> to vector<1x256xf32>
    %44 = vector.broadcast %43 : vector<1x256xf32> to vector<2x256xf32>
    %45 = arith.addf %42, %44 : vector<2x256xf32>
    %cst_23 = arith.constant 0.000000e+00 : f32
    %46 = vector.broadcast %cst_23 : f32 to vector<2x256xf32>
    %47 = arith.maximumf %45, %46 : vector<2x256xf32>
    %48 = arith.truncf %47 : vector<2x256xf32> to vector<2x256xbf16>
    %c0_24 = arith.constant 0 : index
    %c0_25 = arith.constant 0 : index
    %49 = vector.load %arg10[%c0_24, %c0_25] : memref<256x256xbf16, #tpu.memory_space<vmem>>, vector<256x256xbf16>
    %cst_26 = arith.constant dense<0.000000e+00> : vector<2x256xf32>
    %50 = tpu.matmul %48, %49, %cst_26 {dimension_numbers = #tpu.dot_dimension_numbers<[1], [0], [0], [1], [0, 0, 1, 1], [], []>} : vector<2x256xbf16>, vector<256x256xbf16>, vector<2x256xf32> -> vector<2x256xf32>
    %c0_27 = arith.constant 0 : index
    %c0_28 = arith.constant 0 : index
    %51 = vector.load %arg11[%c0_27, %c0_28] : memref<2x256xf32, #tpu.memory_space<vmem>>, vector<2x256xf32>
    %52 = vector.extract_strided_slice %51 {offsets = [0, 0], sizes = [1, 256], strides = [1, 1]} : vector<2x256xf32> to vector<1x256xf32>
    %53 = vector.broadcast %52 : vector<1x256xf32> to vector<2x256xf32>
    %54 = arith.mulf %50, %53 : vector<2x256xf32>
    %55 = vector.extract_strided_slice %51 {offsets = [1, 0], sizes = [1, 256], strides = [1, 1]} : vector<2x256xf32> to vector<1x256xf32>
    %56 = vector.broadcast %55 : vector<1x256xf32> to vector<2x256xf32>
    %57 = arith.addf %54, %56 : vector<2x256xf32>
    %58 = arith.truncf %57 : vector<2x256xf32> to vector<2x256xbf16>
    %c0_29 = arith.constant 0 : index
    %c0_30 = arith.constant 0 : index
    %59 = vector.load %arg12[%c0_29, %c0_30] : memref<256x32xbf16, #tpu.memory_space<vmem>>, vector<256x32xbf16>
    %cst_31 = arith.constant dense<0.000000e+00> : vector<2x32xf32>
    %60 = tpu.matmul %58, %59, %cst_31 {dimension_numbers = #tpu.dot_dimension_numbers<[1], [0], [0], [1], [0, 0, 1, 1], [], []>} : vector<2x256xbf16>, vector<256x32xbf16>, vector<2x32xf32> -> vector<2x32xf32>
    %c0_32 = arith.constant 0 : index
    %c0_33 = arith.constant 0 : index
    %61 = vector.load %arg13[%c0_32, %c0_33] : memref<1x32xf32, #tpu.memory_space<vmem>>, vector<1x32xf32>
    %62 = vector.broadcast %61 : vector<1x32xf32> to vector<2x32xf32>
    %63 = arith.addf %60, %62 : vector<2x32xf32>
    %cst_34 = arith.constant 0.000000e+00 : f32
    %64 = vector.broadcast %cst_34 : f32 to vector<2x32xf32>
    %65 = arith.maximumf %63, %64 : vector<2x32xf32>
    %66 = arith.truncf %65 : vector<2x32xf32> to vector<2x32xbf16>
    %c0_35 = arith.constant 0 : index
    %c0_36 = arith.constant 0 : index
    %67 = vector.load %arg14[%c0_35, %c0_36] : memref<32x8xbf16, #tpu.memory_space<vmem>>, vector<32x8xbf16>
    %cst_37 = arith.constant dense<0.000000e+00> : vector<2x8xf32>
    %68 = tpu.matmul %66, %67, %cst_37 {dimension_numbers = #tpu.dot_dimension_numbers<[1], [0], [0], [1], [0, 0, 1, 1], [], []>} : vector<2x32xbf16>, vector<32x8xbf16>, vector<2x8xf32> -> vector<2x8xf32>
    %c0_38 = arith.constant 0 : index
    %c0_39 = arith.constant 0 : index
    %69 = vector.load %arg15[%c0_38, %c0_39] : memref<1x8xf32, #tpu.memory_space<vmem>>, vector<1x8xf32>
    %70 = vector.broadcast %69 : vector<1x8xf32> to vector<2x8xf32>
    %71 = arith.addf %68, %70 : vector<2x8xf32>
    %c0_40 = arith.constant 0 : index
    %c0_41 = arith.constant 0 : index
    %72 = vector.load %arg16[%c0_40, %c0_41] : memref<2x8xf32, #tpu.memory_space<vmem>>, vector<2x8xf32>
    tpu.vector_store %arg16[%c0_40, %c0_41], %71 {strides = array<i32>} : memref<2x8xf32, #tpu.memory_space<vmem>>, vector<2x8xf32>,
    return
  }
  func.func @transform_0(%arg0: i32) -> (i32, i32) {
    %c0_i32 = arith.constant 0 : i32
    %c0_i32_0 = arith.constant 0 : i32
    return %arg0, %c0_i32 : i32, i32
  }
  func.func @transform_1(%arg0: i32) -> (i32, i32) {
    %c0_i32 = arith.constant 0 : i32
    %c0_i32_0 = arith.constant 0 : i32
    %c0_i32_1 = arith.constant 0 : i32
    return %c0_i32, %c0_i32_0 : i32, i32
  }
  func.func @transform_2(%arg0: i32) -> (i32, i32) {
    %c0_i32 = arith.constant 0 : i32
    %c0_i32_0 = arith.constant 0 : i32
    %c0_i32_1 = arith.constant 0 : i32
    return %c0_i32, %c0_i32_0 : i32, i32
  }
  func.func @transform_3(%arg0: i32) -> (i32, i32) {
    %c0_i32 = arith.constant 0 : i32
    %c0_i32_0 = arith.constant 0 : i32
    %c0_i32_1 = arith.constant 0 : i32
    return %c0_i32, %c0_i32_0 : i32, i32
  }
  func.func @transform_4(%arg0: i32) -> (i32, i32) {
    %c0_i32 = arith.constant 0 : i32
    %c0_i32_0 = arith.constant 0 : i32
    %c0_i32_1 = arith.constant 0 : i32
    return %c0_i32, %c0_i32_0 : i32, i32
  }
  func.func @transform_5(%arg0: i32) -> (i32, i32) {
    %c0_i32 = arith.constant 0 : i32
    %c0_i32_0 = arith.constant 0 : i32
    %c0_i32_1 = arith.constant 0 : i32
    return %c0_i32, %c0_i32_0 : i32, i32
  }
  func.func @transform_6(%arg0: i32) -> (i32, i32) {
    %c0_i32 = arith.constant 0 : i32
    %c0_i32_0 = arith.constant 0 : i32
    %c0_i32_1 = arith.constant 0 : i32
    return %c0_i32, %c0_i32_0 : i32, i32
  }
  func.func @transform_7(%arg0: i32) -> (i32, i32) {
    %c0_i32 = arith.constant 0 : i32
    %c0_i32_0 = arith.constant 0 : i32
    %c0_i32_1 = arith.constant 0 : i32
    return %c0_i32, %c0_i32_0 : i32, i32
  }
  func.func @transform_8(%arg0: i32) -> (i32, i32) {
    %c0_i32 = arith.constant 0 : i32
    %c0_i32_0 = arith.constant 0 : i32
    %c0_i32_1 = arith.constant 0 : i32
    return %c0_i32, %c0_i32_0 : i32, i32
  }
  func.func @transform_9(%arg0: i32) -> (i32, i32) {
    %c0_i32 = arith.constant 0 : i32
    %c0_i32_0 = arith.constant 0 : i32
    %c0_i32_1 = arith.constant 0 : i32
    return %c0_i32, %c0_i32_0 : i32, i32
  }
  func.func @transform_10(%arg0: i32) -> (i32, i32) {
    %c0_i32 = arith.constant 0 : i32
    %c0_i32_0 = arith.constant 0 : i32
    %c0_i32_1 = arith.constant 0 : i32
    return %c0_i32, %c0_i32_0 : i32, i32
  }
  func.func @transform_11(%arg0: i32) -> (i32, i32) {
    %c0_i32 = arith.constant 0 : i32
    %c0_i32_0 = arith.constant 0 : i32
    %c0_i32_1 = arith.constant 0 : i32
    return %c0_i32, %c0_i32_0 : i32, i32
  }
  func.func @transform_12(%arg0: i32) -> (i32, i32) {
    %c0_i32 = arith.constant 0 : i32
    %c0_i32_0 = arith.constant 0 : i32
    %c0_i32_1 = arith.constant 0 : i32
    return %c0_i32, %c0_i32_0 : i32, i32
  }
  func.func @transform_13(%arg0: i32) -> (i32, i32) {
    %c0_i32 = arith.constant 0 : i32
    %c0_i32_0 = arith.constant 0 : i32
    %c0_i32_1 = arith.constant 0 : i32
    return %c0_i32, %c0_i32_0 : i32, i32
  }
  func.func @transform_14(%arg0: i32) -> (i32, i32) {
    %c0_i32 = arith.constant 0 : i32
    %c0_i32_0 = arith.constant 0 : i32
    %c0_i32_1 = arith.constant 0 : i32
    return %c0_i32, %c0_i32_0 : i32, i32
  }
  func.func @transform_15(%arg0: i32) -> (i32, i32) {
    %c0_i32 = arith.constant 0 : i32
    %c0_i32_0 = arith.constant 0 : i32
    return %arg0, %c0_i32 : i32, i32
  }
}

</mosaic_0001>

<bundles_post_ra>
// kernel: _lambda_.1
= control target key start
LH: loop header
LB: loop body
LE: loop exit
PB: predicated region body
PF: predicated region fallthrough
CT: control target
= control target key end

     0   :  { %20 = vsyncpa [#allocation3], 0  ;;  %s4474_s0 = inlined_call_operand.vmem [shape: bf16[2,1024], index: 0, kind: input, shape index: {}]   ;;  %s4475_s1 = inlined_call_operand.hbm [shape: bf16[1024,256], index: 1, kind: input, shape index: {}]   ;;  %s4476_s2 = inlined_call_operand.vmem [shape: f32[2,256], index: 2, kind: input, shape index: {}]   ;;  %s4477_s3 = inlined_call_operand.hbm [shape: bf16[256,512], index: 3, kind: input, shape index: {}]   ;;  %s4478_s4 = inlined_call_operand.vmem [shape: f32[2,512], index: 4, kind: input, shape index: {}]   ;;  %s4479_s5 = inlined_call_operand.hbm [shape: bf16[512,256], index: 5, kind: input, shape index: {}]   ;;  %s4480_s6 = inlined_call_operand.hbm [shape: f32[2,256], index: 6, kind: input, shape index: {}]   ;;  %s4481_s7 = inlined_call_operand.vmem [shape: bf16[256,256], index: 7, kind: input, shape index: {}]   ;;  %s4482_s8 = inlined_call_operand.hbm [shape: f32[2,256], index: 8, kind: input, shape index: {}]   ;;  %s4483_s9 = inlined_call_operand.hbm [shape: bf16[256,256], index: 9, kind: input, shape index: {}]   ;;  %s4484_s10 = inlined_call_operand.hbm [shape: f32[2,256], index: 10, kind: input, shape index: {}]   ;;  %s4485_s11 = inlined_call_operand.hbm [shape: bf16[256,32], index: 11, kind: input, shape index: {}]   ;;  %s4486_s12 = inlined_call_operand.vmem [shape: f32[1,32], index: 12, kind: input, shape index: {}]   ;;  %s4487_s13 = inlined_call_operand.vmem [shape: bf16[32,8], index: 13, kind: input, shape index: {}]   ;;  %s4488_s14 = inlined_call_operand.vmem [shape: f32[1,8], index: 14, kind: input, shape index: {}]   ;;  %s4489_s15 = inlined_call_operand.hbm [shape: f32[2,8], index: 15, kind: output, shape index: {}]  }
   0x1   :  { %21 = vsyncpa [#allocation6], 0 }
   0x2   :  { %22 = vsyncpa [#allocation9], 0 }
   0x3   :  { %23 = vsyncpa [#allocation12], 0 }
   0x4   :  { %24 = vsyncpa [#allocation15], 0 }
   0x5   :  { %25 = vsyncpa [#allocation4], 0  ;;  %s4164_s18 = smov [#allocation5]  }
   0x6   :  { %s47_s19 = sshll.u32 %s4164_s18, 4  ;;  %s48_s19 = int_to_ptr.vmem [resolvable:$true] %s47_s19 }
   0x7   :  { %s3980_s20 = scalar_lea.vmem %s48_s19, 8192  ;;  %p3985_p1 = scmp.lt.s32.totalorder %s48_s19, %s48_s19 }
   0x8   :  { %p3981_p0 = scmp.ne.s32.totalorder %s48_s19, %s3980_s20  ;;  %p3986_p2 = scmp.lt.s32.totalorder %s3980_s20, %s3980_s20 }
   0xa   :  { %p3987_p3 = por %p3986_p2, %p3985_p1 }
   0xc   :  { %p3988_p4 = pnand %p3987_p3, %p3981_p0 }
   0xe   :  { %3991 = shalt.err (!%p3988_p4)
}
   0xf   :  { %s4165_s21 = smov 256   ;;  %s4166_s22 = smov 16  }
  0x10   :  { %53 = dma.hbm_to_vmem [thread:$0]  %s4477_s3, 8192, %s48_s19, [#allocation6], %s4165_s21, %s4165_s21, %s4166_s22  }
  0x11   :  { %s4167_s25 = smov [#allocation8]  }
  0x12   :  { %s74_s26 = sshll.u32 %s4167_s25, 4  ;;  %s75_s26 = int_to_ptr.vmem [resolvable:$true] %s74_s26 }
  0x13   :  { %s4000_s27 = scalar_lea.vmem %s75_s26, 64  ;;  %p4005_p6 = scmp.lt.s32.totalorder %s75_s26, %s75_s26 }
  0x14   :  { %p4001_p5 = scmp.ne.s32.totalorder %s75_s26, %s4000_s27  ;;  %p4006_p7 = scmp.lt.s32.totalorder %s4000_s27, %s4000_s27 }
  0x16   :  { %p4007_p8 = por %p4006_p7, %p4005_p6 }
  0x18   :  { %p4008_p9 = pnand %p4007_p8, %p4001_p5 }
  0x1a   :  { %4011 = shalt.err (!%p4008_p9)
}
  0x1b   :  { %77 = dma.hbm_to_vmem [thread:$0]  %s4480_s6, 64, %s75_s26, [#allocation9]  }
  0x1c   :  { %s4168_s30 = smov [#allocation11]   ;;  %s4169_s17 = smov [#allocation2]  }
  0x1d   :  { %s95_s16 = sshll.u32 %s4168_s30, 4  ;;  %s33_s18 = sshll.u32 %s4169_s17, 4  ;;  %s96_s16 = int_to_ptr.vmem [resolvable:$true] %s95_s16  ;;  %s34_s18 = int_to_ptr.vmem [resolvable:$true] %s33_s18 }
  0x1e   :  { %s4020_s3 = scalar_lea.vmem %s96_s16, 4096  ;;  %p4025_p11 = scmp.lt.s32.totalorder %s96_s16, %s96_s16 }
  0x1f   :  { %p4021_p10 = scmp.ne.s32.totalorder %s96_s16, %s4020_s3  ;;  %p4026_p12 = scmp.lt.s32.totalorder %s4020_s3, %s4020_s3 }
  0x21   :  { %p4027_p13 = por %p4026_p12, %p4025_p11 }
  0x23   :  { %p4028_p0 = pnand %p4027_p13, %p4021_p10 }
  0x25   :  { %4031 = shalt.err (!%p4028_p0)
}
  0x26   :  { %s4170_s19 = smov 128   ;;  %s4171_s20 = smov 8  }
  0x27   :  { %101 = dma.hbm_to_vmem [thread:$0]  %s4483_s9, 4096, %s96_s16, [#allocation12], %s4170_s19, %s4170_s19, %s4171_s20  }
  0x28   :  { %s4040_s6 = scalar_lea.vmem %s34_s18, 16384  ;;  %p4045_p2 = scmp.lt.s32.totalorder %s34_s18, %s34_s18 }
  0x29   :  { %p4041_p1 = scmp.ne.s32.totalorder %s34_s18, %s4040_s6  ;;  %p4046_p3 = scmp.lt.s32.totalorder %s4040_s6, %s4040_s6 }
  0x2b   :  { %p4047_p4 = por %p4046_p3, %p4045_p2 }
  0x2d   :  { %p4048_p5 = pnand %p4047_p4, %p4041_p1 }
  0x2f   :  { %4051 = shalt.err (!%p4048_p5)
}
  0x30   :  { %39 = dma.hbm_to_vmem [thread:$0]  %s4475_s1, 16384, %s34_s18, [#allocation3], %s4170_s19, %s4170_s19, %s4171_s20  }
  0x31   :  { %s4172_s25 = smov [#allocation7]   ;;  %s4173_s27 = smov [#allocation10]  }
  0x32   :  { %s61_s26 = sshll.u32 %s4172_s25, 4  ;;  %s86_s28 = sshll.u32 %s4173_s27, 4  ;;  %s62_s26 = int_to_ptr.vmem [resolvable:$true] %s61_s26  ;;  %s87_s28 = int_to_ptr.vmem [resolvable:$true] %s86_s28 }
  0x33   :  { %s4060_s29 = scalar_lea.vmem %s62_s26, 8192  ;;  %p4065_p7 = scmp.lt.s32.totalorder %s62_s26, %s62_s26 }
  0x34   :  { %p4061_p6 = scmp.ne.s32.totalorder %s62_s26, %s4060_s29  ;;  %p4066_p8 = scmp.lt.s32.totalorder %s4060_s29, %s4060_s29 }
  0x36   :  { %p4067_p9 = por %p4066_p8, %p4065_p7 }
  0x38   :  { %p4068_p10 = pnand %p4067_p9, %p4061_p6 }
  0x3a   :  { %4071 = shalt.err (!%p4068_p10)
}
  0x3b   :  { %67 = dma.hbm_to_vmem [thread:$0]  %s4479_s5, 8192, %s62_s26, [#allocation6], %s4170_s19, %s4170_s19, %s4171_s20  }
  0x3c   :  { %s4080_s16 = scalar_lea.vmem %s87_s28, 64  ;;  %p4085_p12 = scmp.lt.s32.totalorder %s87_s28, %s87_s28 }
  0x3d   :  { %p4081_p11 = scmp.ne.s32.totalorder %s87_s28, %s4080_s16  ;;  %p4086_p13 = scmp.lt.s32.totalorder %s4080_s16, %s4080_s16 }
  0x3f   :  { %p4087_p0 = por %p4086_p13, %p4085_p12 }
  0x41   :  { %p4088_p1 = pnand %p4087_p0, %p4081_p11 }
  0x43   :  { %4091 = shalt.err (!%p4088_p1)
}
  0x44   :  { %89 = dma.hbm_to_vmem [thread:$0]  %s4482_s8, 64, %s87_s28, [#allocation9]  }
  0x45   :  { %s4174_s18 = smov [#allocation13]   ;;  %s4175_s21 = smov [#allocation14]  }
  0x46   :  { %s108_s3 = sshll.u32 %s4174_s18, 4  ;;  %s117_s22 = sshll.u32 %s4175_s21, 4  ;;  %s109_s3 = int_to_ptr.vmem [resolvable:$true] %s108_s3  ;;  %s118_s22 = int_to_ptr.vmem [resolvable:$true] %s117_s22 }
  0x47   :  { %s4100_s6 = scalar_lea.vmem %s109_s3, 64  ;;  %p4105_p3 = scmp.lt.s32.totalorder %s109_s3, %s109_s3 }
  0x48   :  { %p4101_p2 = scmp.ne.s32.totalorder %s109_s3, %s4100_s6  ;;  %p4106_p4 = scmp.lt.s32.totalorder %s4100_s6, %s4100_s6 }
  0x4a   :  { %p4107_p5 = por %p4106_p4, %p4105_p3 }
  0x4c   :  { %p4108_p6 = pnand %p4107_p5, %p4101_p2 }
  0x4e   :  { %4111 = shalt.err (!%p4108_p6)
}
  0x4f   :  { %111 = dma.hbm_to_vmem [thread:$0]  %s4484_s10, 64, %s109_s3, [#allocation12]  }
  0x50   :  { %s4120_s20 = scalar_lea.vmem %s118_s22, 2048  ;;  %p4125_p8 = scmp.lt.s32.totalorder %s118_s22, %s118_s22 }
  0x51   :  { %p4121_p7 = scmp.ne.s32.totalorder %s118_s22, %s4120_s20  ;;  %p4126_p9 = scmp.lt.s32.totalorder %s4120_s20, %s4120_s20 }
  0x53   :  { %p4127_p10 = por %p4126_p9, %p4125_p8 }
  0x55   :  { %p4128_p11 = pnand %p4127_p10, %p4121_p7 }
  0x57   :  { %4131 = shalt.err (!%p4128_p11)
}
  0x58   :  { %s4176_s8 = smov 64   ;;  %s4177_s23 = smov 4  }
  0x59   :  { %123 = dma.hbm_to_vmem [thread:$0]  %s4485_s11, 2048, %s118_s22, [#allocation15], %s4176_s8, %s4176_s8, %s4177_s23  }
  0x5a   :  { %4152 = dma.done.wait [#allocation3], 16384  }
  0x5b   :  { %4153 = vsyncadd [#allocation3], 4294950912 }
  0x5c   :  { %4154 = dma.done.wait [#allocation6], 16384  }
  0x5d   :  { %4155 = vsyncadd [#allocation6], 4294950912 }
  0x5e   :  { %4156 = dma.done.wait [#allocation9], 128  }
  0x5f   :  { %4157 = vsyncadd [#allocation9], 4294967168 }
  0x60   :  { %4158 = dma.done.wait [#allocation12], 4160  }
  0x61   :  { %4159 = vsyncadd [#allocation12], 4294963136 }
  0x62   :  { %4160 = dma.done.wait [#allocation15], 2048  }
  0x63   :  { %4161 = vsyncadd [#allocation15], 4294965248  ;;  %v3473_v0 = vld [vmem:[#allocation2 + $0x74] ss:$8 sps:$4 sm:$0xff]   ;;  %v3477_v2 = vld [vmem:[#allocation2 + $0x70] ss:$8 sps:$4 sm:$0xff]   ;;  %v289_v38 = vlaneseq }
  0x64   :  { %v3475_v1 = vld [vmem:[#allocation2 + $0x174] ss:$8 sps:$4 sm:$0xff]   ;;  %982 = vmatprep.subr.bf16.mxu0 %v3473_v0  ;;  %v3478_v3 = vld [vmem:[#allocation2 + $0x170] ss:$8 sps:$4 sm:$0xff]   ;;  %v3479_v4 = vld [vmem:[#allocation2 + $0x64] ss:$8 sps:$4 sm:$0xff]  }
  0x65   :  { %1023 = vmatprep.subr.bf16.mxu1 %v3475_v1  ;;  %983 = vmatpush1.bf16.msra.mxu0 %v3477_v2  ;;  %v3481_v5 = vld [vmem:[#allocation2 + $0x164] ss:$8 sps:$4 sm:$0xff]   ;;  %v3483_v6 = vld [vmem:[#allocation2 + $0x60] ss:$8 sps:$4 sm:$0xff]   ;;  %v3485_v8 = vld [vmem:[#allocation2 + $0x54] ss:$8 sps:$4 sm:$0xff]  }
  0x66   :  { %1024 = vmatpush1.bf16.msra.mxu1 %v3478_v3  ;;  %984 = vmatprep.subr.bf16.mxu0 %v3479_v4  ;;  %v3484_v7 = vld [vmem:[#allocation2 + $0x160] ss:$8 sps:$4 sm:$0xff]   ;;  %v3487_v9 = vld [vmem:[#allocation2 + $0x154] ss:$8 sps:$4 sm:$0xff]   ;;  %v3489_v10 = vld [vmem:[#allocation2 + $0x50] ss:$8 sps:$4 sm:$0xff]  }
  0x67   :  { %1025 = vmatprep.subr.bf16.mxu1 %v3481_v5  ;;  %v3490_v11 = vld [vmem:[#allocation2 + $0x150] ss:$8 sps:$4 sm:$0xff]   ;;  %v3491_v12 = vld [vmem:[#allocation2 + $0x44] ss:$8 sps:$4 sm:$0xff]   ;;  %v3495_v14 = vld [vmem:[#allocation2 + $0x40] ss:$8 sps:$4 sm:$0xff]  }
  0x68   :  { %v3493_v13 = vld [vmem:[#allocation2 + $0x144] ss:$8 sps:$4 sm:$0xff]   ;;  %v3496_v15 = vld [vmem:[#allocation2 + $0x140] ss:$8 sps:$4 sm:$0xff]   ;;  %v3497_v16 = vld [vmem:[#allocation2 + $0x34] ss:$8 sps:$4 sm:$0xff]  }
  0x69   :  { %985 = vmatpush1.bf16.msra.mxu0 %v3483_v6  ;;  %v3499_v17 = vld [vmem:[#allocation2 + $0x134] ss:$8 sps:$4 sm:$0xff]   ;;  %v3501_v18 = vld [vmem:[#allocation2 + $0x30] ss:$8 sps:$4 sm:$0xff]   ;;  %v3503_v20 = vld [vmem:[#allocation2 + $0x24] ss:$8 sps:$4 sm:$0xff]  }
  0x6a   :  { %1026 = vmatpush1.bf16.msra.mxu1 %v3484_v7  ;;  %986 = vmatprep.subr.bf16.mxu0 %v3485_v8  ;;  %v3502_v19 = vld [vmem:[#allocation2 + $0x130] ss:$8 sps:$4 sm:$0xff]   ;;  %v3505_v21 = vld [vmem:[#allocation2 + $0x124] ss:$8 sps:$4 sm:$0xff]   ;;  %v3507_v22 = vld [vmem:[#allocation2 + $0x20] ss:$8 sps:$4 sm:$0xff]  }
  0x6b   :  { %1027 = vmatprep.subr.bf16.mxu1 %v3487_v9  ;;  %v3508_v23 = vld [vmem:[#allocation2 + $0x120] ss:$8 sps:$4 sm:$0xff]   ;;  %v3509_v24 = vld [vmem:[#allocation2 + $0x14] ss:$8 sps:$4 sm:$0xff]   ;;  %v3513_v26 = vld [vmem:[#allocation2 + $0x10] ss:$8 sps:$4 sm:$0xff]  }
  0x6c   :  { %v3511_v25 = vld [vmem:[#allocation2 + $0x114] ss:$8 sps:$4 sm:$0xff]   ;;  %v3514_v27 = vld [vmem:[#allocation2 + $0x110] ss:$8 sps:$4 sm:$0xff]   ;;  %v3515_v28 = vld [vmem:[#allocation2 + $0x4] ss:$8 sps:$4 sm:$0xff]  }
  0x6d   :  { %987 = vmatpush1.bf16.msra.mxu0 %v3489_v10  ;;  %v3517_v29 = vld [vmem:[#allocation2 + $0x104] ss:$8 sps:$4 sm:$0xff]   ;;  %v3519_v30 = vld [vmem:[#allocation2] ss:$8 sps:$4 sm:$0xff]   ;;  %v3521_v32 = vld [vmem:[#allocation2 + $0xf4] ss:$8 sps:$4 sm:$0xff]  }
  0x6e   :  { %1028 = vmatpush1.bf16.msra.mxu1 %v3490_v11  ;;  %988 = vmatprep.subr.bf16.mxu0 %v3491_v12  ;;  %v3520_v31 = vld [vmem:[#allocation2 + $0x100] ss:$8 sps:$4 sm:$0xff]   ;;  %v3523_v33 = vld [vmem:[#allocation2 + $0x1f4] ss:$8 sps:$4 sm:$0xff]   ;;  %v3525_v34 = vld [vmem:[#allocation2 + $0xf0] ss:$8 sps:$4 sm:$0xff]  }
  0x6f   :  { %1029 = vmatprep.subr.bf16.mxu1 %v3493_v13  ;;  %v3526_v35 = vld [vmem:[#allocation2 + $0x1f0] ss:$8 sps:$4 sm:$0xff]   ;;  %v4178_v36 = vmov 1966171168   ;;  %v3527_v39 = vld [vmem:[#allocation2 + $0xe4] ss:$8 sps:$4 sm:$0xff]  }
  0x70   :  { %v287_v37 = vunpack.c.l.s4 %v4178_v36  ;;  %v3529_v40 = vld [vmem:[#allocation2 + $0x1e4] ss:$8 sps:$4 sm:$0xff]   ;;  %v3531_v41 = vld [vmem:[#allocation2 + $0xe0] ss:$8 sps:$4 sm:$0xff]   ;;  %v4286_v43 = vshrl.u32 %v289_v38, 7  ;;  %vm4180_vm0 = vmmov 0  }
  0x71   :  { %989 = vmatpush1.bf16.msra.mxu0 %v3495_v14  ;;  %v3532_v44 = vld [vmem:[#allocation2 + $0x1e0] ss:$8 sps:$4 sm:$0xff]   ;;  %v3533_v45 = vld [vmem:[#allocation2 + $0xd4] ss:$8 sps:$4 sm:$0xff]   ;;  %v3537_v47 = vld [vmem:[#allocation2 + $0xd0] ss:$8 sps:$4 sm:$0xff]  }
  0x72   :  { %1030 = vmatpush1.bf16.msra.mxu1 %v3496_v15  ;;  %990 = vmatprep.subr.bf16.mxu0 %v3497_v16  ;;  %v288_v42 = vunpack.c.0.s8 %v287_v37  ;;  %v3535_v46 = vld [vmem:[#allocation2 + $0x1d4] ss:$8 sps:$4 sm:$0xff]   ;;  %v3538_v48 = vld [vmem:[#allocation2 + $0x1d0] ss:$8 sps:$4 sm:$0xff]   ;;  %v3539_v50 = vld [vmem:[#allocation2 + $0xc4] ss:$8 sps:$4 sm:$0xff]  }
  0x73   :  { %1031 = vmatprep.subr.bf16.mxu1 %v3499_v17  ;;  %v3541_v51 = vld [vmem:[#allocation2 + $0x1c4] ss:$8 sps:$4 sm:$0xff]   ;;  %v3543_v53 = vld [vmem:[#allocation2 + $0xc0] ss:$8 sps:$4 sm:$0xff]   ;;  %v3545_v57 = vld [vmem:[#allocation2 + $0xb4] ss:$8 sps:$4 sm:$0xff]  }
  0x74   :  { %v291_v49 = vsub.s32 %v288_v42, %v4286_v43  ;;  %v155_v52 = vld [vmem:[%s4474_s0] sm:$0xff]  ;;  %v3547_v58 = vld [vmem:[#allocation2 + $0x1b4] ss:$8 sps:$4 sm:$0xff]   ;;  %v3549_v61 = vld [vmem:[#allocation2 + $0xb0] ss:$8 sps:$4 sm:$0xff]   ;;  %vm3016_vm1 = vcmask 261120  }
  0x75   :  { %991 = vmatpush1.bf16.msra.mxu0 %v3501_v18  ;;  %v285_v54 = vcombine.high %v155_v52, %v155_v52  ;;  %v3544_v56 = vld [vmem:[#allocation2 + $0x1c0] ss:$8 sps:$4 sm:$0xff]   ;;  %v3550_v0 = vld [vmem:[#allocation2 + $0x1b0] ss:$8 sps:$4 sm:$0xff]   ;;  %v3551_v1 = vld [vmem:[#allocation2 + $0xa4] ss:$8 sps:$4 sm:$0xff]  }
  0x76   :  { %1032 = vmatpush1.bf16.msra.mxu1 %v3502_v19  ;;  %992 = vmatprep.subr.bf16.mxu0 %v3503_v20  ;;  %v292_v55 = vrot.slane %v155_v52, %v291_v49  ;;  %v3553_v2 = vld [vmem:[#allocation2 + $0x1a4] ss:$8 sps:$4 sm:$0xff]   ;;  %v3555_v4 = vld [vmem:[#allocation2 + $0xa0] ss:$8 sps:$4 sm:$0xff]   ;;  %v3557_v6 = vld [vmem:[#allocation2 + $0x94] ss:$8 sps:$4 sm:$0xff]  }
  0x77   :  { %1033 = vmatprep.subr.bf16.mxu1 %v3505_v21  ;;  %v299_v60 = vrot.slane %v285_v54, %v291_v49  ;;  %v3556_v5 = vld [vmem:[#allocation2 + $0x1a0] ss:$8 sps:$4 sm:$0xff]   ;;  %v3559_v7 = vld [vmem:[#allocation2 + $0x194] ss:$8 sps:$4 sm:$0xff]   ;;  %v3561_v8 = vld [vmem:[#allocation2 + $0x90] ss:$8 sps:$4 sm:$0xff]  }
  0x78   :  { %v300_v59 = vcombine.high %v292_v55, %v292_v55  ;;  %v3562_v9 = vld [vmem:[#allocation2 + $0x190] ss:$8 sps:$4 sm:$0xff]   ;;  %v3563_v10 = vld [vmem:[#allocation2 + $0x84] ss:$8 sps:$4 sm:$0xff]   ;;  %v3567_v13 = vld [vmem:[#allocation2 + $0x80] ss:$8 sps:$4 sm:$0xff]   ;;  %v308_v14 = vrot.slane %v292_v55, %v291_v49 }
  0x79   :  { %993 = vmatpush1.bf16.msra.mxu0 %v3507_v22  ;;  %v4292_v63 = vrot.slane %v299_v60, %v291_v49  ;;  %v3565_v11 = vld [vmem:[#allocation2 + $0x184] ss:$8 sps:$4 sm:$0xff]   ;;  %v301_v12 = vcombine.high %v299_v60, %v299_v60  ;;  %v3568_v15 = vld [vmem:[#allocation2 + $0x180] ss:$8 sps:$4 sm:$0xff]   ;;  %v3572_v16 = vld [vmem:[#allocation2 + $0x274] ss:$8 sps:$4 sm:$0xff]  }
  0x7a   :  { %1034 = vmatpush1.bf16.msra.mxu1 %v3508_v23  ;;  %994 = vmatprep.subr.bf16.mxu0 %v3509_v24  ;;  %v322_v62 = vrot.slane %v300_v59, %v291_v49  ;;  %v3575_v17 = vld [vmem:[#allocation2 + $0x374] ss:$8 sps:$4 sm:$0xff]   ;;  %v330_v19 = vcombine.high %v308_v14, %v308_v14  ;;  %v3570_v20 = vld [vmem:[#allocation2 + $0x270] ss:$8 sps:$4 sm:$0xff]   ;;  %v3578_v22 = vld [vmem:[#allocation2 + $0x264] ss:$8 sps:$4 sm:$0xff]  }
  0x7b   :  { %1035 = vmatprep.subr.bf16.mxu1 %v3511_v25  ;;  %v329_v18 = vrot.slane %v301_v12, %v291_v49  ;;  %v3573_v21 = vld [vmem:[#allocation2 + $0x370] ss:$8 sps:$4 sm:$0xff]   ;;  %v3581_v23 = vld [vmem:[#allocation2 + $0x364] ss:$8 sps:$4 sm:$0xff]   ;;  %v3576_v25 = vld [vmem:[#allocation2 + $0x260] ss:$8 sps:$4 sm:$0xff]  }
  0x7c   :  { %v332_v3 = vcombine.high %v322_v62, %v322_v62  ;;  %1014 = vmatprep.mubr.bf16.mxu0 %v322_v62  ;;  %v3599_v36 = vld [vmem:[#allocation2 + $0x334] ss:$8 sps:$4 sm:$0xff]   ;;  %v3594_v37 = vld [vmem:[#allocation2 + $0x230] ss:$8 sps:$4 sm:$0xff]   ;;  %v3603_v42 = vld [vmem:[#allocation2 + $0x320] ss:$8 sps:$4 sm:$0xff]  }
  0x7d   :  { %995 = vmatpush1.bf16.msra.mxu0 %v3513_v26  ;;  %v333_v24 = vcombine.high %v329_v18, %v329_v18  ;;  %v3579_v26 = vld [vmem:[#allocation2 + $0x360] ss:$8 sps:$4 sm:$0xff]   ;;  %v3597_v38 = vld [vmem:[#allocation2 + $0x330] ss:$8 sps:$4 sm:$0xff]   ;;  %v3617_v49 = vld [vmem:[#allocation2 + $0x304] ss:$8 sps:$4 sm:$0xff]  }
  0x7e   :  { %1036 = vmatpush1.bf16.msra.mxu1 %v3514_v27  ;;  %996 = vmatprep.subr.bf16.mxu0 %v3515_v28  ;;  %v3584_v27 = vld [vmem:[#allocation2 + $0x254] ss:$8 sps:$4 sm:$0xff]   ;;  %v3618_v54 = vld [vmem:[#allocation2 + $0x2f0] ss:$8 sps:$4 sm:$0xff]   ;;  %v3627_v59 = vld [vmem:[#allocation2 + $0x3e0] ss:$8 sps:$4 sm:$0xff]  }
  0x7f   :  { %1037 = vmatprep.subr.bf16.mxu1 %v3517_v29  ;;  %1055 = vmatprep.mubr.bf16.mxu1 %v332_v3  ;;  %v3587_v28 = vld [vmem:[#allocation2 + $0x354] ss:$8 sps:$4 sm:$0xff]   ;;  %v3582_v29 = vld [vmem:[#allocation2 + $0x250] ss:$8 sps:$4 sm:$0xff]   ;;  %v3636_v3 = vld [vmem:[#allocation2 + $0x2c0] ss:$8 sps:$4 sm:$0xff]  }
  0x80   :  { %v3620_v52 = vld [vmem:[#allocation2 + $0x2f4] ss:$8 sps:$4 sm:$0xff]   ;;  %v3621_v55 = vld [vmem:[#allocation2 + $0x3f0] ss:$8 sps:$4 sm:$0xff]   ;;  %v3651_v12 = vld [vmem:[#allocation2 + $0x3a0] ss:$8 sps:$4 sm:$0xff]  }
  0x81   :  { %997 = vmatpush1.bf16.msra.mxu0 %v3519_v30  ;;  %v3585_v30 = vld [vmem:[#allocation2 + $0x350] ss:$8 sps:$4 sm:$0xff]   ;;  %v3632_v60 = vld [vmem:[#allocation2 + $0x2d4] ss:$8 sps:$4 sm:$0xff]   ;;  %vm3060_vm2 = vcmask 58368  }
  0x82   :  { %1038 = vmatpush1.bf16.msra.mxu1 %v3520_v31  ;;  %998 = vmatprep.subr.bf16.mxu0 %v3521_v32  ;;  %v3590_v31 = vld [vmem:[#allocation2 + $0x244] ss:$8 sps:$4 sm:$0xff]   ;;  %v3630_v62 = vld [vmem:[#allocation2 + $0x2d0] ss:$8 sps:$4 sm:$0xff]  }
  0x83   :  { %1039 = vmatprep.subr.bf16.mxu1 %v3523_v33  ;;  %v3593_v32 = vld [vmem:[#allocation2 + $0x344] ss:$8 sps:$4 sm:$0xff]   ;;  %v3588_v33 = vld [vmem:[#allocation2 + $0x240] ss:$8 sps:$4 sm:$0xff]  }
  0x85   :  { %999 = vmatpush2.bf16.msra.mxu0 %v3525_v34  ;;  %v3591_v34 = vld [vmem:[#allocation2 + $0x340] ss:$8 sps:$4 sm:$0xff]  }
  0x86   :  { %1040 = vmatpush2.bf16.msra.mxu1 %v3526_v35  ;;  %1000 = vmatprep.subr.bf16.mxu0 %v3527_v39  ;;  %v3596_v35 = vld [vmem:[#allocation2 + $0x234] ss:$8 sps:$4 sm:$0xff]   ;;  %v3602_v39 = vld [vmem:[#allocation2 + $0x224] ss:$8 sps:$4 sm:$0xff]  }
  0x87   :  { %1041 = vmatprep.subr.bf16.mxu1 %v3529_v40  ;;  %v3605_v40 = vld [vmem:[#allocation2 + $0x324] ss:$8 sps:$4 sm:$0xff]  }
  0x89   :  { %1001 = vmatpush2.bf16.msra.mxu0 %v3531_v41  ;;  %v3600_v41 = vld [vmem:[#allocation2 + $0x220] ss:$8 sps:$4 sm:$0xff]  }
  0x8a   :  { %1042 = vmatpush2.bf16.msra.mxu1 %v3532_v44  ;;  %1002 = vmatprep.subr.bf16.mxu0 %v3533_v45  ;;  %v3608_v44 = vld [vmem:[#allocation2 + $0x214] ss:$8 sps:$4 sm:$0xff]  }
  0x8b   :  { %1043 = vmatprep.subr.bf16.mxu1 %v3535_v46  ;;  %v3611_v45 = vld [vmem:[#allocation2 + $0x314] ss:$8 sps:$4 sm:$0xff]   ;;  %v3606_v46 = vld [vmem:[#allocation2 + $0x210] ss:$8 sps:$4 sm:$0xff]  }
  0x8d   :  { %1003 = vmatpush2.bf16.msra.mxu0 %v3537_v47  ;;  %v3609_v47 = vld [vmem:[#allocation2 + $0x310] ss:$8 sps:$4 sm:$0xff]  }
  0x8e   :  { %1044 = vmatpush2.bf16.msra.mxu1 %v3538_v48  ;;  %1004 = vmatprep.subr.bf16.mxu0 %v3539_v50  ;;  %v3614_v48 = vld [vmem:[#allocation2 + $0x204] ss:$8 sps:$4 sm:$0xff]   ;;  %v3612_v50 = vld [vmem:[#allocation2 + $0x200] ss:$8 sps:$4 sm:$0xff]  }
  0x8f   :  { %1045 = vmatprep.subr.bf16.mxu1 %v3541_v51  ;;  %v3615_v51 = vld [vmem:[#allocation2 + $0x300] ss:$8 sps:$4 sm:$0xff]  }
  0x91   :  { %1005 = vmatpush2.bf16.msra.mxu0 %v3543_v53  ;;  %v3623_v53 = vld [vmem:[#allocation2 + $0x3f4] ss:$8 sps:$4 sm:$0xff]  }
  0x92   :  { %1046 = vmatpush2.bf16.msra.mxu1 %v3544_v56  ;;  %1006 = vmatprep.subr.bf16.mxu0 %v3545_v57  ;;  %v3626_v56 = vld [vmem:[#allocation2 + $0x2e4] ss:$8 sps:$4 sm:$0xff]  }
  0x93   :  { %1047 = vmatprep.subr.bf16.mxu1 %v3547_v58  ;;  %v3629_v57 = vld [vmem:[#allocation2 + $0x3e4] ss:$8 sps:$4 sm:$0xff]   ;;  %v3624_v58 = vld [vmem:[#allocation2 + $0x2e0] ss:$8 sps:$4 sm:$0xff]  }
  0x95   :  { %1007 = vmatpush2.bf16.msra.mxu0 %v3549_v61  ;;  %v3635_v61 = vld [vmem:[#allocation2 + $0x3d4] ss:$8 sps:$4 sm:$0xff]  }
  0x96   :  { %1048 = vmatpush2.bf16.msra.mxu1 %v3550_v0  ;;  %1008 = vmatprep.subr.bf16.mxu0 %v3551_v1  ;;  %v3633_v0 = vld [vmem:[#allocation2 + $0x3d0] ss:$8 sps:$4 sm:$0xff]   ;;  %v3638_v1 = vld [vmem:[#allocation2 + $0x2c4] ss:$8 sps:$4 sm:$0xff]  }
  0x97   :  { %1049 = vmatprep.subr.bf16.mxu1 %v3553_v2  ;;  %v3641_v2 = vld [vmem:[#allocation2 + $0x3c4] ss:$8 sps:$4 sm:$0xff]  }
  0x99   :  { %1009 = vmatpush2.bf16.msra.mxu0 %v3555_v4  ;;  %v3639_v4 = vld [vmem:[#allocation2 + $0x3c0] ss:$8 sps:$4 sm:$0xff]  }
  0x9a   :  { %1050 = vmatpush2.bf16.msra.mxu1 %v3556_v5  ;;  %1010 = vmatprep.subr.bf16.mxu0 %v3557_v6  ;;  %v3644_v5 = vld [vmem:[#allocation2 + $0x2b4] ss:$8 sps:$4 sm:$0xff]  }
  0x9b   :  { %1051 = vmatprep.subr.bf16.mxu1 %v3559_v7  ;;  %v3647_v6 = vld [vmem:[#allocation2 + $0x3b4] ss:$8 sps:$4 sm:$0xff]   ;;  %v3642_v7 = vld [vmem:[#allocation2 + $0x2b0] ss:$8 sps:$4 sm:$0xff]  }
  0x9d   :  { %1011 = vmatpush2.bf16.msra.mxu0 %v3561_v8  ;;  %v3645_v8 = vld [vmem:[#allocation2 + $0x3b0] ss:$8 sps:$4 sm:$0xff]  }
  0x9e   :  { %1052 = vmatpush2.bf16.msra.mxu1 %v3562_v9  ;;  %1012 = vmatprep.subr.bf16.mxu0 %v3563_v10  ;;  %v3650_v9 = vld [vmem:[#allocation2 + $0x2a4] ss:$8 sps:$4 sm:$0xff]  }
  0x9f   :  { %1053 = vmatprep.subr.bf16.mxu1 %v3565_v11  ;;  %v3653_v10 = vld [vmem:[#allocation2 + $0x3a4] ss:$8 sps:$4 sm:$0xff]   ;;  %v3648_v11 = vld [vmem:[#allocation2 + $0x2a0] ss:$8 sps:$4 sm:$0xff]  }
  0xa1   :  { %1013 = vmatpush2.bf16.msra.mxu0 %v3567_v13  ;;  %v3656_v13 = vld [vmem:[#allocation2 + $0x294] ss:$8 sps:$4 sm:$0xff]  }
  0xa2   :  { %1054 = vmatpush2.bf16.msra.mxu1 %v3568_v15  ;;  %1064 = vmatprep.subr.bf16.mxu0 %v3572_v16  ;;  %v3654_v15 = vld [vmem:[#allocation2 + $0x290] ss:$8 sps:$4 sm:$0xff]  }
  0xa3   :  { %1105 = vmatprep.subr.bf16.mxu1 %v3575_v17  ;;  %v3657_v16 = vld [vmem:[#allocation2 + $0x390] ss:$8 sps:$4 sm:$0xff]   ;;  %v3662_v17 = vld [vmem:[#allocation2 + $0x284] ss:$8 sps:$4 sm:$0xff]  }
  0xa4   :  { %1015 = vmatmul.mubr.bf16.vlgmr.msra.gmra.mxu0 %v308_v14  ;;  %v3659_v14 = vld [vmem:[#allocation2 + $0x394] ss:$8 sps:$4 sm:$0xff]  }
  0xa5   :  { %1056 = vmatmul.mubr.bf16.vlgmr.msra.gmra.mxu1 %v330_v19  ;;  %1065 = vmatpush1.bf16.msra.mxu0 %v3570_v20  ;;  %v3660_v19 = vld [vmem:[#allocation2 + $0x280] ss:$8 sps:$4 sm:$0xff]  }
  0xa6   :  { %1106 = vmatpush1.bf16.msra.mxu1 %v3573_v21  ;;  %1066 = vmatprep.subr.bf16.mxu0 %v3578_v22  ;;  %v3663_v20 = vld [vmem:[#allocation2 + $0x380] ss:$8 sps:$4 sm:$0xff]   ;;  %v331_v21 = vcombine.high %v4292_v63, %v4292_v63 }
  0xa7   :  { %1107 = vmatprep.subr.bf16.mxu1 %v3581_v23  ;;  %1096 = vmatprep.mubr.bf16.mxu0 %v329_v18  ;;  %v3665_v18 = vld [vmem:[#allocation2 + $0x384] ss:$8 sps:$4 sm:$0xff]   ;;  %v3666_v22 = vld [vmem:[#allocation5 + $0xe0] ss:$16 sps:$4 sm:$0xff]  }
  0xa8   :  { %1137 = vmatprep.mubr.bf16.mxu1 %v333_v24  ;;  %v3668_v23 = vld [vmem:[#allocation5 + $0xe4] ss:$16 sps:$4 sm:$0xff]   ;;  %v3669_v24 = vld [vmem:[#allocation5 + $0xe8] ss:$16 sps:$4 sm:$0xff]  }
  0xa9   :  { %1067 = vmatpush1.bf16.msra.mxu0 %v3576_v25  ;;  %v3671_v25 = vld [vmem:[#allocation5 + $0xec] ss:$16 sps:$4 sm:$0xff]  }
  0xaa   :  { %1108 = vmatpush1.bf16.msra.mxu1 %v3579_v26  ;;  %1068 = vmatprep.subr.bf16.mxu0 %v3584_v27  ;;  %v3674_v26 = vld [vmem:[#allocation5 + $0xc4] ss:$16 sps:$4 sm:$0xff]   ;;  %v3677_v27 = vld [vmem:[#allocation5 + $0xcc] ss:$16 sps:$4 sm:$0xff]  }
  0xab   :  { %1109 = vmatprep.subr.bf16.mxu1 %v3587_v28  ;;  %v3672_v28 = vld [vmem:[#allocation5 + $0xc0] ss:$16 sps:$4 sm:$0xff]  }
  0xad   :  { %1069 = vmatpush1.bf16.msra.mxu0 %v3582_v29  ;;  %v3675_v29 = vld [vmem:[#allocation5 + $0xc8] ss:$16 sps:$4 sm:$0xff]  }
  0xae   :  { %1110 = vmatpush1.bf16.msra.mxu1 %v3585_v30  ;;  %1070 = vmatprep.subr.bf16.mxu0 %v3590_v31  ;;  %v3680_v30 = vld [vmem:[#allocation5 + $0xa4] ss:$16 sps:$4 sm:$0xff]   ;;  %v3683_v31 = vld [vmem:[#allocation5 + $0xac] ss:$16 sps:$4 sm:$0xff]  }
  0xaf   :  { %1111 = vmatprep.subr.bf16.mxu1 %v3593_v32  ;;  %v3678_v32 = vld [vmem:[#allocation5 + $0xa0] ss:$16 sps:$4 sm:$0xff]  }
  0xb1   :  { %1071 = vmatpush1.bf16.msra.mxu0 %v3588_v33  ;;  %v3686_v33 = vld [vmem:[#allocation5 + $0x84] ss:$16 sps:$4 sm:$0xff]  }
  0xb2   :  { %1112 = vmatpush1.bf16.msra.mxu1 %v3591_v34  ;;  %1072 = vmatprep.subr.bf16.mxu0 %v3596_v35  ;;  %v3689_v34 = vld [vmem:[#allocation5 + $0x8c] ss:$16 sps:$4 sm:$0xff]   ;;  %v3684_v35 = vld [vmem:[#allocation5 + $0x80] ss:$16 sps:$4 sm:$0xff]  }
  0xb3   :  { %1113 = vmatprep.subr.bf16.mxu1 %v3599_v36  ;;  %v3687_v36 = vld [vmem:[#allocation5 + $0x88] ss:$16 sps:$4 sm:$0xff]  }
  0xb5   :  { %1073 = vmatpush1.bf16.msra.mxu0 %v3594_v37  ;;  %v3692_v37 = vld [vmem:[#allocation5 + $0x64] ss:$16 sps:$4 sm:$0xff]  }
  0xb6   :  { %1114 = vmatpush1.bf16.msra.mxu1 %v3597_v38  ;;  %1074 = vmatprep.subr.bf16.mxu0 %v3602_v39  ;;  %v3695_v38 = vld [vmem:[#allocation5 + $0x6c] ss:$16 sps:$4 sm:$0xff]   ;;  %v3690_v39 = vld [vmem:[#allocation5 + $0x60] ss:$16 sps:$4 sm:$0xff]  }
  0xb7   :  { %1115 = vmatprep.subr.bf16.mxu1 %v3605_v40  ;;  %v3693_v40 = vld [vmem:[#allocation5 + $0x68] ss:$16 sps:$4 sm:$0xff]  }
  0xb9   :  { %1075 = vmatpush1.bf16.msra.mxu0 %v3600_v41  ;;  %v3698_v41 = vld [vmem:[#allocation5 + $0x44] ss:$16 sps:$4 sm:$0xff]  }
  0xba   :  { %1116 = vmatpush1.bf16.msra.mxu1 %v3603_v42  ;;  %1076 = vmatprep.subr.bf16.mxu0 %v3608_v44  ;;  %v3701_v42 = vld [vmem:[#allocation5 + $0x4c] ss:$16 sps:$4 sm:$0xff]   ;;  %v3696_v44 = vld [vmem:[#allocation5 + $0x40] ss:$16 sps:$4 sm:$0xff]  }
  0xbb   :  { %1117 = vmatprep.subr.bf16.mxu1 %v3611_v45  ;;  %v3699_v45 = vld [vmem:[#allocation5 + $0x48] ss:$16 sps:$4 sm:$0xff]  }
  0xbd   :  { %1077 = vmatpush1.bf16.msra.mxu0 %v3606_v46  ;;  %v3704_v46 = vld [vmem:[#allocation5 + $0x24] ss:$16 sps:$4 sm:$0xff]  }
  0xbe   :  { %1118 = vmatpush1.bf16.msra.mxu1 %v3609_v47  ;;  %1078 = vmatprep.subr.bf16.mxu0 %v3614_v48  ;;  %v3707_v47 = vld [vmem:[#allocation5 + $0x2c] ss:$16 sps:$4 sm:$0xff]   ;;  %v3702_v48 = vld [vmem:[#allocation5 + $0x20] ss:$16 sps:$4 sm:$0xff]  }
  0xbf   :  { %1119 = vmatprep.subr.bf16.mxu1 %v3617_v49  ;;  %v3705_v49 = vld [vmem:[#allocation5 + $0x28] ss:$16 sps:$4 sm:$0xff]  }
  0xc1   :  { %1079 = vmatpush1.bf16.msra.mxu0 %v3612_v50  ;;  %v3710_v50 = vld [vmem:[#allocation5 + $0x4] ss:$16 sps:$4 sm:$0xff]  }
  0xc2   :  { %1120 = vmatpush1.bf16.msra.mxu1 %v3615_v51  ;;  %1080 = vmatprep.subr.bf16.mxu0 %v3620_v52  ;;  %v3713_v51 = vld [vmem:[#allocation5 + $0xc] ss:$16 sps:$4 sm:$0xff]   ;;  %v3708_v52 = vld [vmem:[#allocation5] ss:$16 sps:$4 sm:$0xff]  }
  0xc3   :  { %1121 = vmatprep.subr.bf16.mxu1 %v3623_v53  ;;  %v3711_v53 = vld [vmem:[#allocation5 + $0x8] ss:$16 sps:$4 sm:$0xff]  }
  0xc5   :  { %1081 = vmatpush2.bf16.msra.mxu0 %v3618_v54  ;;  %v3716_v54 = vld [vmem:[#allocation5 + $0x1e4] ss:$16 sps:$4 sm:$0xff]  }
  0xc6   :  { %1122 = vmatpush2.bf16.msra.mxu1 %v3621_v55  ;;  %1082 = vmatprep.subr.bf16.mxu0 %v3626_v56  ;;  %v3719_v55 = vld [vmem:[#allocation5 + $0x1ec] ss:$16 sps:$4 sm:$0xff]   ;;  %v3714_v56 = vld [vmem:[#allocation5 + $0x1e0] ss:$16 sps:$4 sm:$0xff]  }
  0xc7   :  { %1123 = vmatprep.subr.bf16.mxu1 %v3629_v57  ;;  %v3717_v57 = vld [vmem:[#allocation5 + $0x1e8] ss:$16 sps:$4 sm:$0xff]  }
  0xc9   :  { %1083 = vmatpush2.bf16.msra.mxu0 %v3624_v58  ;;  %v3722_v58 = vld [vmem:[#allocation5 + $0x1c4] ss:$16 sps:$4 sm:$0xff]  }
  0xca   :  { %1124 = vmatpush2.bf16.msra.mxu1 %v3627_v59  ;;  %1084 = vmatprep.subr.bf16.mxu0 %v3632_v60  ;;  %v3725_v59 = vld [vmem:[#allocation5 + $0x1cc] ss:$16 sps:$4 sm:$0xff]   ;;  %v3720_v60 = vld [vmem:[#allocation5 + $0x1c0] ss:$16 sps:$4 sm:$0xff]  }
  0xcb   :  { %1125 = vmatprep.subr.bf16.mxu1 %v3635_v61  ;;  %v3723_v61 = vld [vmem:[#allocation5 + $0x1c8] ss:$16 sps:$4 sm:$0xff]  }
  0xcd   :  { %1085 = vmatpush2.bf16.msra.mxu0 %v3630_v62  ;;  %v3728_v62 = vld [vmem:[#allocation5 + $0x1a4] ss:$16 sps:$4 sm:$0xff]  }
  0xce   :  { %1126 = vmatpush2.bf16.msra.mxu1 %v3633_v0  ;;  %1086 = vmatprep.subr.bf16.mxu0 %v3638_v1  ;;  %v3731_v0 = vld [vmem:[#allocation5 + $0x1ac] ss:$16 sps:$4 sm:$0xff]   ;;  %v3726_v1 = vld [vmem:[#allocation5 + $0x1a0] ss:$16 sps:$4 sm:$0xff]  }
  0xcf   :  { %1127 = vmatprep.subr.bf16.mxu1 %v3641_v2  ;;  %v3729_v2 = vld [vmem:[#allocation5 + $0x1a8] ss:$16 sps:$4 sm:$0xff]  }
  0xd1   :  { %1087 = vmatpush2.bf16.msra.mxu0 %v3636_v3  ;;  %v3734_v3 = vld [vmem:[#allocation5 + $0x184] ss:$16 sps:$4 sm:$0xff]  }
  0xd2   :  { %1128 = vmatpush2.bf16.msra.mxu1 %v3639_v4  ;;  %1088 = vmatprep.subr.bf16.mxu0 %v3644_v5  ;;  %v3737_v4 = vld [vmem:[#allocation5 + $0x18c] ss:$16 sps:$4 sm:$0xff]   ;;  %v3732_v5 = vld [vmem:[#allocation5 + $0x180] ss:$16 sps:$4 sm:$0xff]  }
  0xd3   :  { %1129 = vmatprep.subr.bf16.mxu1 %v3647_v6  ;;  %v3735_v6 = vld [vmem:[#allocation5 + $0x188] ss:$16 sps:$4 sm:$0xff]  }
  0xd5   :  { %1089 = vmatpush2.bf16.msra.mxu0 %v3642_v7  ;;  %v3740_v7 = vld [vmem:[#allocation5 + $0x164] ss:$16 sps:$4 sm:$0xff]  }
  0xd6   :  { %1130 = vmatpush2.bf16.msra.mxu1 %v3645_v8  ;;  %1090 = vmatprep.subr.bf16.mxu0 %v3650_v9  ;;  %v3743_v8 = vld [vmem:[#allocation5 + $0x16c] ss:$16 sps:$4 sm:$0xff]   ;;  %v3738_v9 = vld [vmem:[#allocation5 + $0x160] ss:$16 sps:$4 sm:$0xff]  }
  0xd7   :  { %1131 = vmatprep.subr.bf16.mxu1 %v3653_v10  ;;  %v3741_v10 = vld [vmem:[#allocation5 + $0x168] ss:$16 sps:$4 sm:$0xff]  }
  0xd9   :  { %1091 = vmatpush2.bf16.msra.mxu0 %v3648_v11  ;;  %v3746_v11 = vld [vmem:[#allocation5 + $0x144] ss:$16 sps:$4 sm:$0xff]  }
  0xda   :  { %1132 = vmatpush2.bf16.msra.mxu1 %v3651_v12  ;;  %1092 = vmatprep.subr.bf16.mxu0 %v3656_v13  ;;  %v3749_v12 = vld [vmem:[#allocation5 + $0x14c] ss:$16 sps:$4 sm:$0xff]   ;;  %v3744_v13 = vld [vmem:[#allocation5 + $0x140] ss:$16 sps:$4 sm:$0xff]  }
  0xdb   :  { %1133 = vmatprep.subr.bf16.mxu1 %v3659_v14  ;;  %v3747_v14 = vld [vmem:[#allocation5 + $0x148] ss:$16 sps:$4 sm:$0xff]  }
  0xdd   :  { %1093 = vmatpush2.bf16.msra.mxu0 %v3654_v15  ;;  %v3752_v15 = vld [vmem:[#allocation5 + $0x124] ss:$16 sps:$4 sm:$0xff]  }
  0xde   :  { %1134 = vmatpush2.bf16.msra.mxu1 %v3657_v16  ;;  %1094 = vmatprep.subr.bf16.mxu0 %v3662_v17  ;;  %v3755_v16 = vld [vmem:[#allocation5 + $0x12c] ss:$16 sps:$4 sm:$0xff]   ;;  %v3750_v17 = vld [vmem:[#allocation5 + $0x120] ss:$16 sps:$4 sm:$0xff]  }
  0xdf   :  { %1135 = vmatprep.subr.bf16.mxu1 %v3665_v18  ;;  %v3753_v18 = vld [vmem:[#allocation5 + $0x128] ss:$16 sps:$4 sm:$0xff]  }
  0xe1   :  { %1095 = vmatpush2.bf16.msra.mxu0 %v3660_v19  ;;  %v3758_v19 = vld [vmem:[#allocation5 + $0x104] ss:$16 sps:$4 sm:$0xff]  }
  0xe2   :  { %1136 = vmatpush2.bf16.msra.mxu1 %v3663_v20  ;;  %1576 = vmatprep.subr.bf16.mxu0 %v3668_v23  ;;  %v3761_v20 = vld [vmem:[#allocation5 + $0x10c] ss:$16 sps:$4 sm:$0xff]  }
  0xe3   :  { %1617 = vmatprep.subr.bf16.mxu1 %v3671_v25  ;;  %v3764_v23 = vld [vmem:[#allocation7 + $0x74] ss:$8 sps:$4 sm:$0xff]  }
  0xe4   :  { %1097 = vmatmul.mubr.bf16.vlgmr.msra.gmra.mxu0 %v4292_v63  ;;  %v3681_v63 = vld [vmem:[#allocation5 + $0xa8] ss:$16 sps:$4 sm:$0xff]  }
  0xe5   :  { %1138 = vmatmul.mubr.bf16.vlgmr.msra.gmra.mxu1 %v331_v21  ;;  %1577 = vmatpush1.bf16.msra.mxu0 %v3666_v22  ;;  %v3756_v21 = vld [vmem:[#allocation5 + $0x100] ss:$16 sps:$4 sm:$0xff]   ;;  %v3759_v22 = vld [vmem:[#allocation5 + $0x108] ss:$16 sps:$4 sm:$0xff]  }
  0xe6   :  { %1618 = vmatpush1.bf16.msra.mxu1 %v3669_v24  ;;  %1578 = vmatprep.subr.bf16.mxu0 %v3674_v26  ;;  %v3767_v24 = vld [vmem:[#allocation7 + $0x174] ss:$8 sps:$4 sm:$0xff]  }
  0xe7   :  { %1619 = vmatprep.subr.bf16.mxu1 %v3677_v27 }
  0xe9   :  { %1579 = vmatpush1.bf16.msra.mxu0 %v3672_v28 }
  0xea   :  { %1620 = vmatpush1.bf16.msra.mxu1 %v3675_v29  ;;  %1580 = vmatprep.subr.bf16.mxu0 %v3680_v30 }
  0xeb   :  { %1621 = vmatprep.subr.bf16.mxu1 %v3683_v31 }
  0xed   :  { %1581 = vmatpush1.bf16.msra.mxu0 %v3678_v32 }
  0xee   :  { %1622 = vmatpush1.bf16.msra.mxu1 %v3681_v63  ;;  %1582 = vmatprep.subr.bf16.mxu0 %v3686_v33  ;;  %v4298_v33 = vsub.s32 0, %v4286_v43 }
  0xef   :  { %1623 = vmatprep.subr.bf16.mxu1 %v3689_v34  ;;  %v1146_v34 = vld [vmem:[%s4476_s2] sm:$0xf] }
  0xf1   :  { %1583 = vmatpush1.bf16.msra.mxu0 %v3684_v35  ;;  %v4304_v35 = vsub.s32 1, %v4286_v43 }
  0xf2   :  { %1624 = vmatpush1.bf16.msra.mxu1 %v3687_v36  ;;  %1584 = vmatprep.subr.bf16.mxu0 %v3692_v37  ;;  %v4307_v36 = vsub.s32 2, %v4286_v43  ;;  %v1151_v37 = vrot.slane %v1146_v34, %v4298_v33 }
  0xf3   :  { %1625 = vmatprep.subr.bf16.mxu1 %v3695_v38  ;;  %v4311_v38 = vsub.s32 3, %v4286_v43 }
  0xf5   :  { %1585 = vmatpush1.bf16.msra.mxu0 %v3690_v39  ;;  %v1171_v39 = vrot.slane %v1146_v34, %v4304_v35 }
  0xf6   :  { %1626 = vmatpush1.bf16.msra.mxu1 %v3693_v40  ;;  %1586 = vmatprep.subr.bf16.mxu0 %v3698_v41  ;;  %v1155_v40 = vrot.slane %v1146_v34, %v4307_v36 }
  0xf7   :  { %1627 = vmatprep.subr.bf16.mxu1 %v3701_v42 }
  0xf9   :  { %1587 = vmatpush1.bf16.msra.mxu0 %v3696_v44 }
  0xfa   :  { %1628 = vmatpush1.bf16.msra.mxu1 %v3699_v45  ;;  %1588 = vmatprep.subr.bf16.mxu0 %v3704_v46  ;;  %v1161_v46 = vrot.slane %v1151_v37, %v4298_v33  ;;  %v3812_v37 = vld [vmem:[#allocation7 + $0xf4] ss:$8 sps:$4 sm:$0xff]  }
  0xfb   :  { %1629 = vmatprep.subr.bf16.mxu1 %v3707_v47  ;;  %v1175_v47 = vrot.slane %v1146_v34, %v4311_v38  ;;  %v3807_v34 = vld [vmem:[#allocation7 + $0x100] ss:$8 sps:$4 sm:$0xff]  }
  0xfd   :  { %1589 = vmatpush1.bf16.msra.mxu0 %v3702_v48 }
  0xfe   :  { %1630 = vmatpush1.bf16.msra.mxu1 %v3705_v49  ;;  %1590 = vmatprep.subr.bf16.mxu0 %v3710_v50 }
  0xff   :  { %1631 = vmatprep.subr.bf16.mxu1 %v3713_v51  ;;  %v1181_v51 = vrot.slane %v1171_v39, %v4304_v35  ;;  %v3815_v39 = vld [vmem:[#allocation7 + $0x1f4] ss:$8 sps:$4 sm:$0xff]  }
 0x101   :  { %1591 = vmatpush1.bf16.msra.mxu0 %v3708_v52 }
 0x102   :  { %1632 = vmatpush1.bf16.msra.mxu1 %v3711_v53  ;;  %1592 = vmatprep.subr.bf16.mxu0 %v3716_v54  ;;  %v1165_v53 = vrot.slane %v1155_v40, %v4298_v33  ;;  %v3810_v40 = vld [vmem:[#allocation7 + $0xf0] ss:$8 sps:$4 sm:$0xff]  }
 0x103   :  { %1633 = vmatprep.subr.bf16.mxu1 %v3719_v55 }
 0x105   :  { %1593 = vmatpush2.bf16.msra.mxu0 %v3714_v56 }
 0x106   :  { %1634 = vmatpush2.bf16.msra.mxu1 %v3717_v57  ;;  %1594 = vmatprep.subr.bf16.mxu0 %v3722_v58  ;;  %v1185_v58 = vrot.slane %v1175_v47, %v4304_v35  ;;  %v3824_v47 = vld [vmem:[#allocation7 + $0xd4] ss:$8 sps:$4 sm:$0xff]  }
 0x107   :  { %1635 = vmatprep.subr.bf16.mxu1 %v3725_v59 }
 0x109   :  { %1595 = vmatpush2.bf16.msra.mxu0 %v3720_v60 }
 0x10a   :  { %1636 = vmatpush2.bf16.msra.mxu1 %v3723_v61  ;;  %1596 = vmatprep.subr.bf16.mxu0 %v3728_v62 }
 0x10b   :  { %1637 = vmatprep.subr.bf16.mxu1 %v3731_v0 }
 0x10d   :  { %1597 = vmatpush2.bf16.msra.mxu0 %v3726_v1 }
 0x10e   :  { %1638 = vmatpush2.bf16.msra.mxu1 %v3729_v2  ;;  %1598 = vmatprep.subr.bf16.mxu0 %v3734_v3 }
 0x10f   :  { %1639 = vmatprep.subr.bf16.mxu1 %v3737_v4  ;;  %v3762_v4 = vld [vmem:[#allocation7 + $0x70] ss:$8 sps:$4 sm:$0xff]  }
 0x111   :  { %1599 = vmatpush2.bf16.msra.mxu0 %v3732_v5  ;;  %v3765_v5 = vld [vmem:[#allocation7 + $0x170] ss:$8 sps:$4 sm:$0xff]  }
 0x112   :  { %1640 = vmatpush2.bf16.msra.mxu1 %v3735_v6  ;;  %1600 = vmatprep.subr.bf16.mxu0 %v3740_v7  ;;  %v3770_v7 = vld [vmem:[#allocation7 + $0x64] ss:$8 sps:$4 sm:$0xff]  }
 0x113   :  { %1641 = vmatprep.subr.bf16.mxu1 %v3743_v8  ;;  %v3773_v8 = vld [vmem:[#allocation7 + $0x164] ss:$8 sps:$4 sm:$0xff]  }
 0x115   :  { %1601 = vmatpush2.bf16.msra.mxu0 %v3738_v9  ;;  %v3768_v9 = vld [vmem:[#allocation7 + $0x60] ss:$8 sps:$4 sm:$0xff]  }
 0x116   :  { %1642 = vmatpush2.bf16.msra.mxu1 %v3741_v10  ;;  %1602 = vmatprep.subr.bf16.mxu0 %v3746_v11  ;;  %v3771_v10 = vld [vmem:[#allocation7 + $0x160] ss:$8 sps:$4 sm:$0xff]   ;;  %v3776_v11 = vld [vmem:[#allocation7 + $0x54] ss:$8 sps:$4 sm:$0xff]  }
 0x117   :  { %1643 = vmatprep.subr.bf16.mxu1 %v3749_v12  ;;  %v3779_v12 = vld [vmem:[#allocation7 + $0x154] ss:$8 sps:$4 sm:$0xff]  }
 0x119   :  { %1603 = vmatpush2.bf16.msra.mxu0 %v3744_v13  ;;  %v3774_v13 = vld [vmem:[#allocation7 + $0x50] ss:$8 sps:$4 sm:$0xff]  }
 0x11a   :  { %1644 = vmatpush2.bf16.msra.mxu1 %v3747_v14  ;;  %1604 = vmatprep.subr.bf16.mxu0 %v3752_v15  ;;  %v3777_v14 = vld [vmem:[#allocation7 + $0x150] ss:$8 sps:$4 sm:$0xff]   ;;  %v3782_v15 = vld [vmem:[#allocation7 + $0x44] ss:$8 sps:$4 sm:$0xff]  }
 0x11b   :  { %1645 = vmatprep.subr.bf16.mxu1 %v3755_v16  ;;  %v3785_v16 = vld [vmem:[#allocation7 + $0x144] ss:$8 sps:$4 sm:$0xff]  }
 0x11d   :  { %1605 = vmatpush2.bf16.msra.mxu0 %v3750_v17  ;;  %v3780_v17 = vld [vmem:[#allocation7 + $0x40] ss:$8 sps:$4 sm:$0xff]  }
 0x11e   :  { %1646 = vmatpush2.bf16.msra.mxu1 %v3753_v18  ;;  %1606 = vmatprep.subr.bf16.mxu0 %v3758_v19  ;;  %v3783_v18 = vld [vmem:[#allocation7 + $0x140] ss:$8 sps:$4 sm:$0xff]   ;;  %v3788_v19 = vld [vmem:[#allocation7 + $0x34] ss:$8 sps:$4 sm:$0xff]  }
 0x11f   :  { %1647 = vmatprep.subr.bf16.mxu1 %v3761_v20  ;;  %v3791_v20 = vld [vmem:[#allocation7 + $0x134] ss:$8 sps:$4 sm:$0xff]  }
 0x121   :  { %1607 = vmatpush2.bf16.msra.mxu0 %v3756_v21  ;;  %v3786_v21 = vld [vmem:[#allocation7 + $0x30] ss:$8 sps:$4 sm:$0xff]  }
 0x122   :  { %1648 = vmatpush2.bf16.msra.mxu1 %v3759_v22  ;;  %2132 = vmatprep.subr.bf16.mxu0 %v3764_v23  ;;  %v3789_v22 = vld [vmem:[#allocation7 + $0x130] ss:$8 sps:$4 sm:$0xff]   ;;  %v3794_v23 = vld [vmem:[#allocation7 + $0x24] ss:$8 sps:$4 sm:$0xff]  }
 0x123   :  { %2173 = vmatprep.subr.bf16.mxu1 %v3767_v24  ;;  %v3797_v24 = vld [vmem:[#allocation7 + $0x124] ss:$8 sps:$4 sm:$0xff]  }
 0x164   :  { %v1016_v25 = vpop.f32.mrf.mxu0 }
 0x165   :  { %v1057_v26 = vpop.f32.mrf.mxu1 }
 0x166   :  { %v1058_v27 = vadd.f32 %v1057_v26, %v1016_v25  ;;  %v1018_v28 = vpop.f32.mrf.mxu0  ;;  %v3792_v25 = vld [vmem:[#allocation7 + $0x20] ss:$8 sps:$4 sm:$0xff]  }
 0x167   :  { %v1059_v29 = vpop.f32.mrf.mxu1  ;;  %v3795_v26 = vld [vmem:[#allocation7 + $0x120] ss:$8 sps:$4 sm:$0xff]  }
 0x168   :  { %v1020_v30 = vpop.f32.mrf.mxu0  ;;  %v1060_v44 = vadd.f32 %v1059_v29, %v1018_v28  ;;  %v3803_v28 = vld [vmem:[#allocation7 + $0x114] ss:$8 sps:$4 sm:$0xff]   ;;  %v3798_v29 = vld [vmem:[#allocation7 + $0x10] ss:$8 sps:$4 sm:$0xff]  }
 0x169   :  { %v1061_v31 = vpop.f32.mrf.mxu1  ;;  %v3801_v30 = vld [vmem:[#allocation7 + $0x110] ss:$8 sps:$4 sm:$0xff]  }
 0x16a   :  { %v1021_v32 = vpop.f32.mrf.mxu0  ;;  %v3806_v31 = vld [vmem:[#allocation7 + $0x4] ss:$8 sps:$4 sm:$0xff]  }
 0x16b   :  { %v1062_v63 = vpop.f32.mrf.mxu1  ;;  %v3809_v32 = vld [vmem:[#allocation7 + $0x104] ss:$8 sps:$4 sm:$0xff]  }
 0x16c   :  { %v3804_v63 = vld [vmem:[#allocation7] ss:$8 sps:$4 sm:$0xff]  }
 0x1a4   :  { %v1098_v41 = vpop.f32.mrf.mxu0 }
 0x1a5   :  { %v1139_v42 = vpop.f32.mrf.mxu1  ;;  %v1099_v45 = vadd.f32 %v1098_v41, %v1058_v27  ;;  %v3800_v27 = vld [vmem:[#allocation7 + $0x14] ss:$8 sps:$4 sm:$0xff]   ;;  %v3813_v41 = vld [vmem:[#allocation7 + $0x1f0] ss:$8 sps:$4 sm:$0xff]  }
 0x1a6   :  { %v1100_v48 = vpop.f32.mrf.mxu0 }
 0x1a7   :  { %v1141_v49 = vpop.f32.mrf.mxu1  ;;  %v1140_v50 = vadd.f32 %v1139_v42, %v1099_v45  ;;  %v1101_v52 = vadd.f32 %v1100_v48, %v1060_v44  ;;  %v3818_v42 = vld [vmem:[#allocation7 + $0xe4] ss:$8 sps:$4 sm:$0xff]   ;;  %v3816_v45 = vld [vmem:[#allocation7 + $0xe0] ss:$8 sps:$4 sm:$0xff]   ;;  %v3827_v48 = vld [vmem:[#allocation7 + $0x1d4] ss:$8 sps:$4 sm:$0xff]  }
 0x1a8   :  { %v1102_v54 = vpop.f32.mrf.mxu0  ;;  %v3821_v44 = vld [vmem:[#allocation7 + $0x1e4] ss:$8 sps:$4 sm:$0xff]  }
 0x1a9   :  { %v1143_v55 = vpop.f32.mrf.mxu1  ;;  %v1166_v56 = vmul.f32 %v1161_v46, %v1140_v50  ;;  %v1142_v57 = vadd.f32 %v1141_v49, %v1101_v52  ;;  %v3819_v46 = vld [vmem:[#allocation7 + $0x1e0] ss:$8 sps:$4 sm:$0xff]   ;;  %v3822_v49 = vld [vmem:[#allocation7 + $0xd0] ss:$8 sps:$4 sm:$0xff]   ;;  %v3833_v52 = vld [vmem:[#allocation7 + $0x1c4] ss:$8 sps:$4 sm:$0xff]  }
 0x1aa   :  { %v1103_v59 = vpop.f32.mrf.mxu0  ;;  %v3825_v50 = vld [vmem:[#allocation7 + $0x1d0] ss:$8 sps:$4 sm:$0xff]   ;;  %v3831_v54 = vld [vmem:[#allocation7 + $0x1c0] ss:$8 sps:$4 sm:$0xff]   ;;  %v3836_v55 = vld [vmem:[#allocation7 + $0xb4] ss:$8 sps:$4 sm:$0xff]  }
 0x1ab   :  { %v1144_v60 = vpop.f32.mrf.mxu1  ;;  %v1186_v61 = vadd.f32 %v1181_v51, %v1166_v56  ;;  %v1167_v62 = vmul.f32 %v1165_v53, %v1142_v57  ;;  %v3830_v51 = vld [vmem:[#allocation7 + $0xc4] ss:$8 sps:$4 sm:$0xff]   ;;  %v3828_v53 = vld [vmem:[#allocation7 + $0xc0] ss:$8 sps:$4 sm:$0xff]   ;;  %v3839_v56 = vld [vmem:[#allocation7 + $0x1b4] ss:$8 sps:$4 sm:$0xff]  }
 0x1ac   :  { %v3834_v57 = vld [vmem:[#allocation7 + $0xb0] ss:$8 sps:$4 sm:$0xff]   ;;  %v3842_v59 = vld [vmem:[#allocation7 + $0xa4] ss:$8 sps:$4 sm:$0xff]  }
 0x1ad   :  { %v1187_v0 = vadd.f32 %v1185_v58, %v1167_v62  ;;  %v1188_v1 = vmax.f32 %v1186_v61, 0.0  ;;  %v3837_v58 = vld [vmem:[#allocation7 + $0x1b0] ss:$8 sps:$4 sm:$0xff]   ;;  %v3845_v60 = vld [vmem:[#allocation7 + $0x1a4] ss:$8 sps:$4 sm:$0xff]  }
 0x1ae   :  { %v3840_v61 = vld [vmem:[#allocation7 + $0xa0] ss:$8 sps:$4 sm:$0xff]  }
 0x1af   :  { %v1189_v2 = vmax.f32 %v1187_v0, 0.0  ;;  %v1190_v6 = vpack.c.bf16 %v1188_v1, %v1188_v1  ;;  %v3843_v62 = vld [vmem:[#allocation7 + $0x1a0] ss:$8 sps:$4 sm:$0xff]   ;;  %v3848_v0 = vld [vmem:[#allocation7 + $0x94] ss:$8 sps:$4 sm:$0xff]  }
 0x1b0   :  { %v3851_v1 = vld [vmem:[#allocation7 + $0x194] ss:$8 sps:$4 sm:$0xff]  }
 0x1b1   :  { %v1191_v3 = vpack.c.bf16 %v1189_v2, %v1189_v2  ;;  %v3846_v2 = vld [vmem:[#allocation7 + $0x90] ss:$8 sps:$4 sm:$0xff]  }
 0x1b3   :  { %1608 = vmatprep.mubr.bf16.mxu0 %v1191_v3  ;;  %1649 = vmatprep.mubr.bf16.mxu1 %v1191_v3  ;;  %v3849_v3 = vld [vmem:[#allocation7 + $0x190] ss:$8 sps:$4 sm:$0xff]  }
 0x1b4   :  { %1609 = vmatmul.mubr.bf16.vlgmr.msra.gmra.mxu0 %v1190_v6  ;;  %1650 = vmatmul.mubr.bf16.vlgmr.msra.gmra.mxu1 %v1190_v6  ;;  %v3852_v6 = vld [vmem:[#allocation7 + $0x80] ss:$8 sps:$4 sm:$0xff]  }
 0x1b5   :  { %2133 = vmatpush1.bf16.msra.mxu0 %v3762_v4  ;;  %2174 = vmatpush1.bf16.msra.mxu1 %v3765_v5  ;;  %v3854_v4 = vld [vmem:[#allocation7 + $0x84] ss:$8 sps:$4 sm:$0xff]  }
 0x1b6   :  { %2134 = vmatprep.subr.bf16.mxu0 %v3770_v7  ;;  %2175 = vmatprep.subr.bf16.mxu1 %v3773_v8  ;;  %v3857_v5 = vld [vmem:[#allocation7 + $0x184] ss:$8 sps:$4 sm:$0xff]   ;;  %v3855_v7 = vld [vmem:[#allocation7 + $0x180] ss:$8 sps:$4 sm:$0xff]   ;;  %v3860_v8 = vld [vmem:[%s4481_s7 + $0x74] ss:$8 sps:$4 sm:$0xff]  }
 0x1b9   :  { %2135 = vmatpush1.bf16.msra.mxu0 %v3768_v9  ;;  %2176 = vmatpush1.bf16.msra.mxu1 %v3771_v10  ;;  %v1670_v9 = vsub.s32 4, %v4286_v43  ;;  %v1658_v10 = vld [vmem:[%s4478_s4] sm:$0xff] }
 0x1ba   :  { %2136 = vmatprep.subr.bf16.mxu0 %v3776_v11  ;;  %2177 = vmatprep.subr.bf16.mxu1 %v3779_v12  ;;  %v1710_v11 = vsub.s32 5, %v4286_v43  ;;  %v1674_v12 = vsub.s32 6, %v4286_v43 }
 0x1bd   :  { %2137 = vmatpush1.bf16.msra.mxu0 %v3774_v13  ;;  %2178 = vmatpush1.bf16.msra.mxu1 %v3777_v14  ;;  %v1663_v13 = vrot.slane %v1658_v10, %v4298_v33  ;;  %v1671_v14 = vrot.slane %v1658_v10, %v1670_v9  ;;  %v3884_v9 = vld [vmem:[%s4481_s7 + $0xf4] ss:$8 sps:$4 sm:$0xff]  }
 0x1be   :  { %2138 = vmatprep.subr.bf16.mxu0 %v3782_v15  ;;  %2179 = vmatprep.subr.bf16.mxu1 %v3785_v16  ;;  %v1714_v15 = vsub.s32 7, %v4286_v43  ;;  %v1703_v16 = vrot.slane %v1658_v10, %v4304_v35 }
 0x1c1   :  { %2139 = vmatpush1.bf16.msra.mxu0 %v3780_v17  ;;  %2180 = vmatpush1.bf16.msra.mxu1 %v3783_v18  ;;  %v1711_v17 = vrot.slane %v1658_v10, %v1710_v11  ;;  %v1667_v18 = vrot.slane %v1658_v10, %v4307_v36  ;;  %v3887_v11 = vld [vmem:[%s4481_s7 + $0xe4] ss:$8 sps:$4 sm:$0xff]  }
 0x1c2   :  { %2140 = vmatprep.subr.bf16.mxu0 %v3788_v19  ;;  %2181 = vmatprep.subr.bf16.mxu1 %v3791_v20  ;;  %v1675_v19 = vrot.slane %v1658_v10, %v1674_v12  ;;  %v1683_v20 = vrot.slane %v1663_v13, %v4298_v33  ;;  %v3885_v12 = vld [vmem:[%s4481_s7 + $0xe0] ss:$8 sps:$4 sm:$0xff]   ;;  %v3890_v13 = vld [vmem:[%s4481_s7 + $0xd4] ss:$8 sps:$4 sm:$0xff]  }
 0x1c4   :  { %v1695_v43 = vrot.slane %v1675_v19, %v4298_v33  ;;  %v3899_v19 = vld [vmem:[%s4481_s7 + $0xa4] ss:$8 sps:$4 sm:$0xff]  }
 0x1c5   :  { %2141 = vmatpush1.bf16.msra.mxu0 %v3786_v21  ;;  %2182 = vmatpush1.bf16.msra.mxu1 %v3789_v22  ;;  %v1691_v21 = vrot.slane %v1671_v14, %v4298_v33  ;;  %v1707_v22 = vrot.slane %v1658_v10, %v4311_v38  ;;  %v3888_v14 = vld [vmem:[%s4481_s7 + $0xd0] ss:$8 sps:$4 sm:$0xff]  }
 0x1c6   :  { %2142 = vmatprep.subr.bf16.mxu0 %v3794_v23  ;;  %2183 = vmatprep.subr.bf16.mxu1 %v3797_v24  ;;  %v1715_v23 = vrot.slane %v1658_v10, %v1714_v15  ;;  %v1723_v24 = vrot.slane %v1703_v16, %v4304_v35  ;;  %v3882_v10 = vld [vmem:[%s4481_s7 + $0xf0] ss:$8 sps:$4 sm:$0xff]   ;;  %v3893_v15 = vld [vmem:[%s4481_s7 + $0xc4] ss:$8 sps:$4 sm:$0xff]   ;;  %v3891_v16 = vld [vmem:[%s4481_s7 + $0xc0] ss:$8 sps:$4 sm:$0xff]  }
 0x1c9   :  { %2143 = vmatpush1.bf16.msra.mxu0 %v3792_v25  ;;  %2184 = vmatpush1.bf16.msra.mxu1 %v3795_v26  ;;  %v1731_v25 = vrot.slane %v1711_v17, %v4304_v35  ;;  %v1687_v26 = vrot.slane %v1667_v18, %v4298_v33  ;;  %v3896_v17 = vld [vmem:[%s4481_s7 + $0xb4] ss:$8 sps:$4 sm:$0xff]   ;;  %v3894_v18 = vld [vmem:[%s4481_s7 + $0xb0] ss:$8 sps:$4 sm:$0xff]  }
 0x1ca   :  { %2144 = vmatprep.subr.bf16.mxu0 %v3800_v27  ;;  %2185 = vmatprep.subr.bf16.mxu1 %v3803_v28 }
 0x1cd   :  { %2145 = vmatpush1.bf16.msra.mxu0 %v3798_v29  ;;  %2186 = vmatpush1.bf16.msra.mxu1 %v3801_v30 }
 0x1ce   :  { %2146 = vmatprep.subr.bf16.mxu0 %v3806_v31  ;;  %2187 = vmatprep.subr.bf16.mxu1 %v3809_v32  ;;  %v1727_v31 = vrot.slane %v1707_v22, %v4304_v35  ;;  %v1735_v32 = vrot.slane %v1715_v23, %v4304_v35  ;;  %v3900_v22 = vld [vmem:[%s4481_s7 + $0x90] ss:$8 sps:$4 sm:$0xff]   ;;  %v3905_v23 = vld [vmem:[%s4481_s7 + $0x84] ss:$8 sps:$4 sm:$0xff]  }
 0x1d1   :  { %2147 = vmatpush1.bf16.msra.mxu0 %v3804_v63  ;;  %2188 = vmatpush1.bf16.msra.mxu1 %v3807_v34 }
 0x1d2   :  { %2148 = vmatprep.subr.bf16.mxu0 %v3812_v37  ;;  %2189 = vmatprep.subr.bf16.mxu1 %v3815_v39 }
 0x1d5   :  { %2149 = vmatpush2.bf16.msra.mxu0 %v3810_v40  ;;  %2190 = vmatpush2.bf16.msra.mxu1 %v3813_v41 }
 0x1d6   :  { %2150 = vmatprep.subr.bf16.mxu0 %v3818_v42  ;;  %2191 = vmatprep.subr.bf16.mxu1 %v3821_v44 }
 0x1d9   :  { %2151 = vmatpush2.bf16.msra.mxu0 %v3816_v45  ;;  %2192 = vmatpush2.bf16.msra.mxu1 %v3819_v46 }
 0x1da   :  { %2152 = vmatprep.subr.bf16.mxu0 %v3824_v47  ;;  %2193 = vmatprep.subr.bf16.mxu1 %v3827_v48 }
 0x1dd   :  { %2153 = vmatpush2.bf16.msra.mxu0 %v3822_v49  ;;  %2194 = vmatpush2.bf16.msra.mxu1 %v3825_v50 }
 0x1de   :  { %2154 = vmatprep.subr.bf16.mxu0 %v3830_v51  ;;  %2195 = vmatprep.subr.bf16.mxu1 %v3833_v52 }
 0x1e1   :  { %2155 = vmatpush2.bf16.msra.mxu0 %v3828_v53  ;;  %2196 = vmatpush2.bf16.msra.mxu1 %v3831_v54 }
 0x1e2   :  { %2156 = vmatprep.subr.bf16.mxu0 %v3836_v55  ;;  %2197 = vmatprep.subr.bf16.mxu1 %v3839_v56  ;;  %v3858_v55 = vld [vmem:[%s4481_s7 + $0x70] ss:$8 sps:$4 sm:$0xff]  }
 0x1e5   :  { %2157 = vmatpush2.bf16.msra.mxu0 %v3834_v57  ;;  %2198 = vmatpush2.bf16.msra.mxu1 %v3837_v58  ;;  %v3863_v58 = vld [vmem:[%s4481_s7 + $0x64] ss:$8 sps:$4 sm:$0xff]  }
 0x1e6   :  { %2158 = vmatprep.subr.bf16.mxu0 %v3842_v59  ;;  %2199 = vmatprep.subr.bf16.mxu1 %v3845_v60  ;;  %v3861_v59 = vld [vmem:[%s4481_s7 + $0x60] ss:$8 sps:$4 sm:$0xff]   ;;  %v3866_v60 = vld [vmem:[%s4481_s7 + $0x54] ss:$8 sps:$4 sm:$0xff]  }
 0x1e9   :  { %2159 = vmatpush2.bf16.msra.mxu0 %v3840_v61  ;;  %2200 = vmatpush2.bf16.msra.mxu1 %v3843_v62  ;;  %v3864_v61 = vld [vmem:[%s4481_s7 + $0x50] ss:$8 sps:$4 sm:$0xff]   ;;  %v3869_v62 = vld [vmem:[%s4481_s7 + $0x44] ss:$8 sps:$4 sm:$0xff]  }
 0x1ea   :  { %2160 = vmatprep.subr.bf16.mxu0 %v3848_v0  ;;  %2201 = vmatprep.subr.bf16.mxu1 %v3851_v1  ;;  %v3867_v0 = vld [vmem:[%s4481_s7 + $0x40] ss:$8 sps:$4 sm:$0xff]   ;;  %v3872_v1 = vld [vmem:[%s4481_s7 + $0x34] ss:$8 sps:$4 sm:$0xff]  }
 0x1ed   :  { %2161 = vmatpush2.bf16.msra.mxu0 %v3846_v2  ;;  %2202 = vmatpush2.bf16.msra.mxu1 %v3849_v3  ;;  %v3870_v2 = vld [vmem:[%s4481_s7 + $0x30] ss:$8 sps:$4 sm:$0xff]   ;;  %v3875_v3 = vld [vmem:[%s4481_s7 + $0x24] ss:$8 sps:$4 sm:$0xff]  }
 0x1ee   :  { %2162 = vmatprep.subr.bf16.mxu0 %v3854_v4  ;;  %2203 = vmatprep.subr.bf16.mxu1 %v3857_v5  ;;  %v3873_v4 = vld [vmem:[%s4481_s7 + $0x20] ss:$8 sps:$4 sm:$0xff]   ;;  %v3878_v5 = vld [vmem:[%s4481_s7 + $0x14] ss:$8 sps:$4 sm:$0xff]  }
 0x1f1   :  { %2163 = vmatpush2.bf16.msra.mxu0 %v3852_v6  ;;  %2204 = vmatpush2.bf16.msra.mxu1 %v3855_v7  ;;  %v3876_v6 = vld [vmem:[%s4481_s7 + $0x10] ss:$8 sps:$4 sm:$0xff]   ;;  %v3881_v7 = vld [vmem:[%s4481_s7 + $0x4] ss:$8 sps:$4 sm:$0xff]  }
 0x1f2   :  { %2452 = vmatprep.subr.bf16.mxu0 %v3860_v8  ;;  %v3879_v8 = vld [vmem:[%s4481_s7] ss:$8 sps:$4 sm:$0xff]  }
 0x274   :  { %v1610_v27 = vpop.f32.mrf.mxu0  ;;  %v1651_v28 = vpop.f32.mrf.mxu1 }
 0x275   :  { %v1696_v29 = vmul.f32 %v1683_v20, %v1610_v27  ;;  %v1698_v30 = vmul.f32 %v1691_v21, %v1651_v28  ;;  %v3897_v20 = vld [vmem:[%s4481_s7 + $0xa0] ss:$8 sps:$4 sm:$0xff]   ;;  %v3902_v21 = vld [vmem:[%s4481_s7 + $0x94] ss:$8 sps:$4 sm:$0xff]  }
 0x276   :  { %v1612_v63 = vpop.f32.mrf.mxu0  ;;  %v1653_v34 = vpop.f32.mrf.mxu1  ;;  %v3909_v27 = vld [vmem:[#allocation11 + $0x60] ss:$8 sps:$4 sm:$0xff]   ;;  %v3914_v28 = vld [vmem:[#allocation11 + $0x54] ss:$8 sps:$4 sm:$0xff]  }
 0x277   :  { %v1736_v37 = vadd.f32 %v1723_v24, %v1696_v29  ;;  %v1738_v39 = vadd.f32 %v1731_v25, %v1698_v30  ;;  %v1697_v40 = vmul.f32 %v1687_v26, %v1612_v63  ;;  %v1699_v41 = vmul.f32 %v1695_v43, %v1653_v34  ;;  %v3903_v24 = vld [vmem:[%s4481_s7 + $0x80] ss:$8 sps:$4 sm:$0xff]   ;;  %v3908_v26 = vld [vmem:[#allocation11 + $0x74] ss:$8 sps:$4 sm:$0xff]   ;;  %v3911_v43 = vld [vmem:[#allocation11 + $0x64] ss:$8 sps:$4 sm:$0xff]  }
 0x278   :  { %v1614_v42 = vpop.f32.mrf.mxu0  ;;  %v1655_v44 = vpop.f32.mrf.mxu1  ;;  %v3906_v25 = vld [vmem:[#allocation11 + $0x70] ss:$8 sps:$4 sm:$0xff]   ;;  %2731 = vmatprep.subr.bf16.mxu1 %v3908_v26  ;;  %v3917_v30 = vld [vmem:[#allocation11 + $0x44] ss:$8 sps:$4 sm:$0xff]  }
 0x279   :  { %v1737_v45 = vadd.f32 %v1727_v31, %v1697_v40  ;;  %v1739_v46 = vadd.f32 %v1735_v32, %v1699_v41  ;;  %v1740_v47 = vmax.f32 %v1736_v37, 0.0  ;;  %v1742_v48 = vmax.f32 %v1738_v39, 0.0  ;;  %v3912_v29 = vld [vmem:[#allocation11 + $0x50] ss:$8 sps:$4 sm:$0xff]   ;;  %v3915_v31 = vld [vmem:[#allocation11 + $0x40] ss:$8 sps:$4 sm:$0xff]  }
 0x27a   :  { %v1615_v49 = vpop.f32.mrf.mxu0  ;;  %v1656_v50 = vpop.f32.mrf.mxu1  ;;  %v3920_v32 = vld [vmem:[#allocation11 + $0x34] ss:$8 sps:$4 sm:$0xff]   ;;  %v3918_v63 = vld [vmem:[#allocation11 + $0x30] ss:$8 sps:$4 sm:$0xff]   ;;  %v3923_v34 = vld [vmem:[#allocation11 + $0x24] ss:$8 sps:$4 sm:$0xff]  }
 0x27b   :  { %v1741_v51 = vmax.f32 %v1737_v45, 0.0  ;;  %v1743_v52 = vmax.f32 %v1739_v46, 0.0  ;;  %v1744_v56 = vpack.c.bf16 %v1740_v47, %v1740_v47  ;;  %v1746_v57 = vpack.c.bf16 %v1742_v48, %v1742_v48  ;;  %v3921_v37 = vld [vmem:[#allocation11 + $0x20] ss:$8 sps:$4 sm:$0xff]   ;;  %v3926_v39 = vld [vmem:[#allocation11 + $0x14] ss:$8 sps:$4 sm:$0xff]  }
 0x27c   :  { %v3924_v40 = vld [vmem:[#allocation11 + $0x10] ss:$8 sps:$4 sm:$0xff]   ;;  %v3929_v41 = vld [vmem:[#allocation11 + $0x4] ss:$8 sps:$4 sm:$0xff]   ;;  %v3927_v42 = vld [vmem:[#allocation11] ss:$8 sps:$4 sm:$0xff]  }
 0x27d   :  { %v1745_v53 = vpack.c.bf16 %v1741_v51, %v1741_v51  ;;  %v1747_v54 = vpack.c.bf16 %v1743_v52, %v1743_v52  ;;  %v3932_v44 = vld [vmem:[#allocation11 + $0xf4] ss:$8 sps:$4 sm:$0xff]   ;;  %v3930_v45 = vld [vmem:[#allocation11 + $0xf0] ss:$8 sps:$4 sm:$0xff]   ;;  %v3935_v46 = vld [vmem:[#allocation11 + $0xe4] ss:$8 sps:$4 sm:$0xff]  }
 0x27e   :  { %v3933_v47 = vld [vmem:[#allocation11 + $0xe0] ss:$8 sps:$4 sm:$0xff]   ;;  %v3938_v48 = vld [vmem:[#allocation11 + $0xd4] ss:$8 sps:$4 sm:$0xff]   ;;  %v3936_v49 = vld [vmem:[#allocation11 + $0xd0] ss:$8 sps:$4 sm:$0xff]  }
 0x27f   :  { %2164 = vmatprep.mubr.bf16.mxu0 %v1745_v53  ;;  %2205 = vmatprep.mubr.bf16.mxu1 %v1747_v54  ;;  %v3941_v50 = vld [vmem:[#allocation11 + $0xc4] ss:$8 sps:$4 sm:$0xff]   ;;  %v3939_v51 = vld [vmem:[#allocation11 + $0xc0] ss:$8 sps:$4 sm:$0xff]   ;;  %v3944_v52 = vld [vmem:[#allocation11 + $0xb4] ss:$8 sps:$4 sm:$0xff]  }
 0x280   :  { %2165 = vmatmul.mubr.bf16.vlgmr.msra.gmra.mxu0 %v1744_v56  ;;  %2206 = vmatmul.mubr.bf16.vlgmr.msra.gmra.mxu1 %v1746_v57  ;;  %v3942_v53 = vld [vmem:[#allocation11 + $0xb0] ss:$8 sps:$4 sm:$0xff]  }
 0x281   :  { %2453 = vmatpush1.bf16.msra.mxu0 %v3858_v55  ;;  %2732 = vmatpush1.bf16.msra.mxu1 %v3906_v25  ;;  %v2214_v54 = vld [vmem:[#allocation8] sm:$0xf]  ;;  %v3955_v25 = vld [vmem:[#allocation14 + $0x38] sm:$0xff]  }
 0x282   :  { %2454 = vmatprep.subr.bf16.mxu0 %v3863_v58  ;;  %2733 = vmatprep.subr.bf16.mxu1 %v3911_v43  ;;  %v2219_v55 = vrot.slane %v2214_v54, %v4298_v33  ;;  %v2239_v56 = vrot.slane %v2214_v54, %v4304_v35  ;;  %v2223_v57 = vrot.slane %v2214_v54, %v4307_v36  ;;  %v3956_v26 = vld [vmem:[#allocation14 + $0x70] sm:$0xff]  }
 0x283   :  { %v3957_v43 = vld [vmem:[#allocation14 + $0x30] sm:$0xff]  }
 0x284   :  { %v2229_v58 = vrot.slane %v2219_v55, %v4298_v33 }
 0x285   :  { %2455 = vmatpush1.bf16.msra.mxu0 %v3861_v59  ;;  %2734 = vmatpush1.bf16.msra.mxu1 %v3909_v27  ;;  %v2243_v59 = vrot.slane %v2214_v54, %v4311_v38  ;;  %v3958_v27 = vld [vmem:[#allocation14 + $0x68] sm:$0xff]  }
 0x286   :  { %2456 = vmatprep.subr.bf16.mxu0 %v3866_v60  ;;  %2735 = vmatprep.subr.bf16.mxu1 %v3914_v28  ;;  %v3959_v28 = vld [vmem:[#allocation14 + $0x28] sm:$0xff]  }
 0x289   :  { %2457 = vmatpush1.bf16.msra.mxu0 %v3864_v61  ;;  %2736 = vmatpush1.bf16.msra.mxu1 %v3912_v29  ;;  %v3960_v29 = vld [vmem:[#allocation14 + $0x60] sm:$0xff]  }
 0x28a   :  { %2458 = vmatprep.subr.bf16.mxu0 %v3869_v62  ;;  %2737 = vmatprep.subr.bf16.mxu1 %v3917_v30  ;;  %v3961_v30 = vld [vmem:[#allocation14 + $0x20] sm:$0xff]  }
 0x28d   :  { %2459 = vmatpush1.bf16.msra.mxu0 %v3867_v0  ;;  %2738 = vmatpush1.bf16.msra.mxu1 %v3915_v31  ;;  %v2249_v0 = vrot.slane %v2239_v56, %v4304_v35  ;;  %v3962_v31 = vld [vmem:[#allocation14 + $0x58] sm:$0xff]  }
 0x28e   :  { %2460 = vmatprep.subr.bf16.mxu0 %v3872_v1  ;;  %2739 = vmatprep.subr.bf16.mxu1 %v3920_v32  ;;  %v2233_v1 = vrot.slane %v2223_v57, %v4298_v33  ;;  %v3963_v32 = vld [vmem:[#allocation14 + $0x18] sm:$0xff]  }
 0x291   :  { %2461 = vmatpush1.bf16.msra.mxu0 %v3870_v2  ;;  %2740 = vmatpush1.bf16.msra.mxu1 %v3918_v63  ;;  %v3964_v63 = vld [vmem:[#allocation14 + $0x50] sm:$0xff]  }
 0x292   :  { %2462 = vmatprep.subr.bf16.mxu0 %v3875_v3  ;;  %2741 = vmatprep.subr.bf16.mxu1 %v3923_v34  ;;  %v3965_v34 = vld [vmem:[#allocation14 + $0x10] sm:$0xff]  }
 0x295   :  { %2463 = vmatpush1.bf16.msra.mxu0 %v3873_v4  ;;  %2742 = vmatpush1.bf16.msra.mxu1 %v3921_v37  ;;  %v2493_v37 = vld [vmem:[#allocation10] sm:$0xf] }
 0x296   :  { %2464 = vmatprep.subr.bf16.mxu0 %v3878_v5  ;;  %2743 = vmatprep.subr.bf16.mxu1 %v3926_v39  ;;  %v2498_v39 = vrot.slane %v2493_v37, %v4298_v33 }
 0x299   :  { %2465 = vmatpush1.bf16.msra.mxu0 %v3876_v6  ;;  %2744 = vmatpush1.bf16.msra.mxu1 %v3924_v40  ;;  %v2253_v6 = vrot.slane %v2243_v59, %v4304_v35  ;;  %v2518_v40 = vrot.slane %v2493_v37, %v4304_v35 }
 0x29a   :  { %2466 = vmatprep.subr.bf16.mxu0 %v3881_v7  ;;  %2745 = vmatprep.subr.bf16.mxu1 %v3929_v41  ;;  %v2502_v41 = vrot.slane %v2493_v37, %v4307_v36 }
 0x29d   :  { %2467 = vmatpush1.bf16.msra.mxu0 %v3879_v8  ;;  %2746 = vmatpush1.bf16.msra.mxu1 %v3927_v42  ;;  %v2508_v42 = vrot.slane %v2498_v39, %v4298_v33 }
 0x29e   :  { %2468 = vmatprep.subr.bf16.mxu0 %v3884_v9  ;;  %2747 = vmatprep.subr.bf16.mxu1 %v3932_v44  ;;  %v2522_v44 = vrot.slane %v2493_v37, %v4311_v38 }
 0x2a1   :  { %2469 = vmatpush2.bf16.msra.mxu0 %v3882_v10  ;;  %2748 = vmatpush2.bf16.msra.mxu1 %v3930_v45  ;;  %v2528_v45 = vrot.slane %v2518_v40, %v4304_v35 }
 0x2a2   :  { %2470 = vmatprep.subr.bf16.mxu0 %v3887_v11  ;;  %2749 = vmatprep.subr.bf16.mxu1 %v3935_v46  ;;  %v2512_v46 = vrot.slane %v2502_v41, %v4298_v33 }
 0x2a5   :  { %2471 = vmatpush2.bf16.msra.mxu0 %v3885_v12  ;;  %2750 = vmatpush2.bf16.msra.mxu1 %v3933_v47 }
 0x2a6   :  { %2472 = vmatprep.subr.bf16.mxu0 %v3890_v13  ;;  %2751 = vmatprep.subr.bf16.mxu1 %v3938_v48 }
 0x2a9   :  { %2473 = vmatpush2.bf16.msra.mxu0 %v3888_v14  ;;  %2752 = vmatpush2.bf16.msra.mxu1 %v3936_v49  ;;  %v2532_v49 = vrot.slane %v2522_v44, %v4304_v35 }
 0x2aa   :  { %2474 = vmatprep.subr.bf16.mxu0 %v3893_v15  ;;  %2753 = vmatprep.subr.bf16.mxu1 %v3941_v50 }
 0x2ad   :  { %2475 = vmatpush2.bf16.msra.mxu0 %v3891_v16  ;;  %2754 = vmatpush2.bf16.msra.mxu1 %v3939_v51 }
 0x2ae   :  { %2476 = vmatprep.subr.bf16.mxu0 %v3896_v17  ;;  %2755 = vmatprep.subr.bf16.mxu1 %v3944_v52 }
 0x2b1   :  { %2477 = vmatpush2.bf16.msra.mxu0 %v3894_v18  ;;  %2756 = vmatpush2.bf16.msra.mxu1 %v3942_v53  ;;  %v3947_v18 = vld [vmem:[#allocation11 + $0xa4] ss:$8 sps:$4 sm:$0xff]  }
 0x2b2   :  { %2478 = vmatprep.subr.bf16.mxu0 %v3899_v19  ;;  %v3945_v19 = vld [vmem:[#allocation11 + $0xa0] ss:$8 sps:$4 sm:$0xff]   ;;  %2757 = vmatprep.subr.bf16.mxu1 %v3947_v18 }
 0x2b5   :  { %2479 = vmatpush2.bf16.msra.mxu0 %v3897_v20  ;;  %2758 = vmatpush2.bf16.msra.mxu1 %v3945_v19  ;;  %v3950_v20 = vld [vmem:[#allocation11 + $0x94] ss:$8 sps:$4 sm:$0xff]  }
 0x2b6   :  { %2480 = vmatprep.subr.bf16.mxu0 %v3902_v21  ;;  %v3948_v21 = vld [vmem:[#allocation11 + $0x90] ss:$8 sps:$4 sm:$0xff]   ;;  %2759 = vmatprep.subr.bf16.mxu1 %v3950_v20 }
 0x2b7   :  { %v3401_v20 = vld [vmem:[%s4486_s12] ss:$0 sm:$0xff] }
 0x2b9   :  { %2481 = vmatpush2.bf16.msra.mxu0 %v3900_v22  ;;  %2760 = vmatpush2.bf16.msra.mxu1 %v3948_v21  ;;  %v3953_v22 = vld [vmem:[#allocation11 + $0x84] ss:$8 sps:$4 sm:$0xff]  }
 0x2ba   :  { %2482 = vmatprep.subr.bf16.mxu0 %v3905_v23  ;;  %v3951_v23 = vld [vmem:[#allocation11 + $0x80] ss:$8 sps:$4 sm:$0xff]   ;;  %2761 = vmatprep.subr.bf16.mxu1 %v3953_v22 }
 0x2bd   :  { %2483 = vmatpush2.bf16.msra.mxu0 %v3903_v24  ;;  %2762 = vmatpush2.bf16.msra.mxu1 %v3951_v23  ;;  %v3954_v24 = vld [vmem:[#allocation14 + $0x78] sm:$0xff]  }
 0x2be   :  { %3422 = vmatprep.subr.bf16.mxu0 %v3954_v24 }
 0x340   :  { %v2166_v60 = vpop.f32.mrf.mxu0  ;;  %v2207_v61 = vpop.f32.mrf.mxu1 }
 0x341   :  { %v2208_v62 = vadd.f32 %v2207_v61, %v2166_v60  ;;  %v3966_v60 = vld [vmem:[#allocation14 + $0x48] sm:$0xff]  }
 0x342   :  { %v2168_v2 = vpop.f32.mrf.mxu0  ;;  %v2209_v3 = vpop.f32.mrf.mxu1  ;;  %v3967_v61 = vld [vmem:[#allocation14 + $0x8] sm:$0xff]  }
 0x343   :  { %v2234_v4 = vmul.f32 %v2229_v58, %v2208_v62  ;;  %v2210_v5 = vadd.f32 %v2209_v3, %v2168_v2  ;;  %v3968_v62 = vld [vmem:[#allocation14 + $0x40] sm:$0xff]  }
 0x344   :  { %v2170_v7 = vpop.f32.mrf.mxu0  ;;  %v2211_v8 = vpop.f32.mrf.mxu1 }
 0x345   :  { %v2254_v9 = vadd.f32 %v2249_v0, %v2234_v4  ;;  %v2235_v10 = vmul.f32 %v2233_v1, %v2210_v5  ;;  %v3969_v0 = vld [vmem:[#allocation14] sm:$0xff]   ;;  %v2772_v1 = vld [vmem:[#allocation13] sm:$0xf] }
 0x346   :  { %v2171_v11 = vpop.f32.mrf.mxu0  ;;  %v2212_v12 = vpop.f32.mrf.mxu1  ;;  %v2777_v2 = vrot.slane %v2772_v1, %v4298_v33  ;;  %v2781_v3 = vrot.slane %v2772_v1, %v4307_v36  ;;  %v2797_v4 = vrot.slane %v2772_v1, %v4304_v35 }
 0x347   :  { %v2255_v13 = vadd.f32 %v2253_v6, %v2235_v10  ;;  %v2256_v14 = vmax.f32 %v2254_v9, 0.0  ;;  %v2801_v6 = vrot.slane %v2772_v1, %v4311_v38  ;;  %v4179_v38 = vmov 0.0  }
 0x348   :  { %v2787_v5 = vrot.slane %v2777_v2, %v4298_v33  ;;  %v2791_v7 = vrot.slane %v2781_v3, %v4298_v33  ;;  %v2807_v9 = vrot.slane %v2797_v4, %v4304_v35  ;;  %v3970_v33 = vld [vmem:[%s4487_s13 + $0x8] sm:$0xff]   ;;  %3447 = vmatprep.subr.bf16.mxu1 %v4179_v38 }
 0x349   :  { %v2257_v15 = vmax.f32 %v2255_v13, 0.0  ;;  %v2258_v17 = vpack.c.bf16 %v2256_v14, %v2256_v14  ;;  %v2811_v11 = vrot.slane %v2801_v6, %v4304_v35  ;;  %v3971_v35 = vld [vmem:[%s4487_s13] sm:$0xff]   ;;  %s4181_s13 = smov [#allocation16]  }
 0x34a   :  { %s3068_s25 = sshll.u32 %s4181_s13, 4  ;;  %s3069_s25 = int_to_ptr.vmem [resolvable:$true] %s3068_s25 }
 0x34b   :  { %v2259_v16 = vpack.c.bf16 %v2257_v15, %v2257_v15  ;;  %s4132_s12 = scalar_lea.vmem %s3069_s25, 32  ;;  %p4137_p13 = scmp.lt.s32.totalorder %s3069_s25, %s3069_s25 }
 0x34c   :  { %p4133_p12 = scmp.ne.s32.totalorder %s3069_s25, %s4132_s12  ;;  %p4138_p0 = scmp.lt.s32.totalorder %s4132_s12, %s4132_s12 }
 0x34d   :  { %2484 = vmatprep.mubr.bf16.mxu0 %v2259_v16 }
 0x34e   :  { %2485 = vmatmul.mubr.bf16.vlgmr.msra.gmra.mxu0 %v2258_v17  ;;  %p4139_p1 = por %p4138_p0, %p4137_p13 }
 0x34f   :  { %3423 = vmatpush3.bf16.msra.mxu0 %v3955_v25 }
 0x350   :  { %3424 = vmatprep.subr.bf16.mxu0 %v3956_v26  ;;  %p4140_p2 = pnand %p4139_p1, %p4133_p12 }
 0x353   :  { %3425 = vmatpush3.bf16.msra.mxu0 %v3957_v43 }
 0x354   :  { %3426 = vmatprep.subr.bf16.mxu0 %v3958_v27  ;;  %v3418_v27 = vld [vmem:[%s4488_s14] ss:$0 sm:$0xff] }
 0x357   :  { %3427 = vmatpush3.bf16.msra.mxu0 %v3959_v28 }
 0x358   :  { %3428 = vmatprep.subr.bf16.mxu0 %v3960_v29 }
 0x35b   :  { %3429 = vmatpush3.bf16.msra.mxu0 %v3961_v30 }
 0x35c   :  { %3430 = vmatprep.subr.bf16.mxu0 %v3962_v31 }
 0x35f   :  { %3431 = vmatpush3.bf16.msra.mxu0 %v3963_v32 }
 0x360   :  { %3432 = vmatprep.subr.bf16.mxu0 %v3964_v63 }
 0x363   :  { %3433 = vmatpush3.bf16.msra.mxu0 %v3965_v34 }
 0x364   :  { %3434 = vmatprep.subr.bf16.mxu0 %v3966_v60 }
 0x367   :  { %3435 = vmatpush3.bf16.msra.mxu0 %v3967_v61 }
 0x368   :  { %3436 = vmatprep.subr.bf16.mxu0 %v3968_v62 }
 0x36b   :  { %3437 = vmatpush3.bf16.msra.mxu0 %v3969_v0 }
 0x40e   :  { %v2486_v47 = vpop.f32.mrf.mxu0 }
 0x40f   :  { %v2513_v48 = vmul.f32 %v2508_v42, %v2486_v47 }
 0x410   :  { %v2488_v50 = vpop.f32.mrf.mxu0 }
 0x411   :  { %v2533_v51 = vadd.f32 %v2528_v45, %v2513_v48  ;;  %v2514_v52 = vmul.f32 %v2512_v46, %v2488_v50 }
 0x412   :  { %v2490_v53 = vpop.f32.mrf.mxu0 }
 0x413   :  { %v2534_v54 = vadd.f32 %v2532_v49, %v2514_v52  ;;  %v2535_v55 = vmax.f32 %v2533_v51, 0.0 }
 0x414   :  { %v2491_v56 = vpop.f32.mrf.mxu0 }
 0x415   :  { %v2536_v57 = vmax.f32 %v2534_v54, 0.0  ;;  %v2537_v59 = vpack.c.bf16 %v2535_v55, %v2535_v55 }
 0x417   :  { %v2538_v58 = vpack.c.bf16 %v2536_v57, %v2536_v57 }
 0x419   :  { %2763 = vmatprep.mubr.bf16.mxu1 %v2538_v58 }
 0x41a   :  { %2764 = vmatmul.mubr.bf16.vlgmr.msra.gmra.mxu1 %v2537_v59 }
 0x41b   :  { %3448 = vmatpush3.bf16.msra.mxu1 %v3970_v33  ;;  %3451 = vmatprep.mubr.msk.bf16.mxu1 %vm4180_vm0, %v4179_v38 }
 0x41c   :  { %3449 = vmatprep.subr.bf16.mxu1 %v4179_v38 }
 0x41f   :  { %3450 = vmatpush3.bf16.msra.mxu1 %v3971_v35 }
 0x4da   :  { %v2765_v8 = vpop.f32.mrf.mxu1 }
 0x4db   :  { %v2792_v10 = vmul.f32 %v2787_v5, %v2765_v8 }
 0x4dc   :  { %v2767_v12 = vpop.f32.mrf.mxu1 }
 0x4dd   :  { %v2793_v13 = vmul.f32 %v2791_v7, %v2767_v12  ;;  %v2812_v14 = vadd.f32 %v2807_v9, %v2792_v10 }
 0x4de   :  { %v2769_v15 = vpop.f32.mrf.mxu1 }
 0x4df   :  { %v2813_v16 = vadd.f32 %v2811_v11, %v2793_v13  ;;  %v2814_v18 = vpack.c.bf16 %v2812_v14, %v2812_v14 }
 0x4e0   :  { %v2770_v36 = vpop.f32.mrf.mxu1 }
 0x4e1   :  { %v2815_v17 = vpack.c.bf16 %v2813_v16, %v2813_v16 }
 0x4e3   :  { %2983 = vmatprep.mubr.bf16.mxu0 %v2815_v17 }
 0x4e4   :  { %2984 = vmatmul.mubr.bf16.vlgmr.msra.gmra.mxu0 %v2814_v18 }
 0x5a4   :  { %v3438_v19 = vpop.f32.mrf.mxu0 }
 0x5a6   :  { %v3439_v21 = vpop.f32.mrf.mxu0 }
 0x5a7   :  { %v3440_v22 = vadd.f32 %v3439_v21, %v3438_v19 }
 0x5a8   :  { %v3441_v23 = vpop.f32.mrf.mxu0 }
 0x5a9   :  { %v2986_v24 = vadd.f32 %v3440_v22, %v3401_v20 }
 0x5aa   :  { %v3442_v25 = vpop.f32.mrf.mxu0 }
 0x5ab   :  { %v2991_v26 = vmax.f32 %v2986_v24, 0.0 }
 0x5ad   :  { %v2992_v43 = vpack.c.bf16 %v2991_v26, %v2991_v26 }
 0x5af   :  { %3452 = vmatmul.mubr.msk.bf16.vlgmr.msra.gmra.mxu1 %vm3016_vm1, %v2992_v43 }
 0x66f   :  { %v3054_v28 = vpop.f32.mrf.mxu1 }
 0x670   :  { %v3055_v29 = vadd.f32 %v3418_v27, %v3054_v28 }
 0x671   :  { %v3453_v30 = vpop.f32.mrf.mxu1 }
 0x672   :  { %3061 = vst.msk [vmem:[#allocation16] sm:$0x3] %vm3060_vm2, %v3055_v29 }
 0x673   :  { %v3057_v31 = vpop.f32.mrf.mxu1 }
 0x674   :  { %4143 = shalt.err (!%p4140_p2)
}
 0x675   :  { %3071 = dma.vmem_to_hbm [thread:$0]  %s3069_s25, 32, %s4489_s15, [#allocation4]   ;;  %v3454_v32 = vpop.f32.mrf.mxu1 }
 0x676   :  { %4162 = dma.done.wait [#allocation4], 32  }
 0x677   :  { %4163 = vsyncadd [#allocation4], 4294967264 }
 0x678   :  { %3075 = vsyncpa [#allocation3], 1 }
 0x679   :  { %3076 = vsyncpa [#allocation6], 1 }
 0x67a   :  { %3077 = vsyncpa [#allocation9], 1 }
 0x67b   :  { %3078 = vsyncpa [#allocation12], 1 }
 0x67c   :  { %3079 = vsyncpa [#allocation15], 1 }
 0x67d   :  { %3080 = vsyncpa [#allocation4], 1 }

</bundles_post_ra>
